<compile_context>
chip_gen: v7x
topology: tpu7x:2x2x1
jax: 0.10.0
libtpu: 0.0.40
codegen_flags: <defaults>
</compile_context>

<pallas_src>
import jax
import jax.numpy as jnp
from jax.experimental import pallas as pl
from jax.experimental.pallas import tpu as pltpu


# --------------------------------------------------------------------------- #
# Kernel
# --------------------------------------------------------------------------- #
def _make_critic_kernel(has_ac, ensemble, hidden, precision):
    """Whole critic ensemble, one batch tile.

    refs (has_ac=True):
      ob (TB, Dob), ac (TB, Dac),
      w1o (Dob, E*H), w1a (Dac, E*H), b1 (1, E*H),
      w2 (E, H, H),   b2 (1, E*H),    w3 (E, 1, H), b3 (1, E),
      out (TB, E)      column e == critic e's Q-value
    """
    E, H = ensemble, hidden

    def kernel(*refs):
        if has_ac:
            (ob_ref, ac_ref, w1o_ref, w1a_ref, b1_ref,
             w2_ref, b2_ref, w3_ref, b3_ref, o_ref) = refs
        else:
            (ob_ref, w1o_ref, b1_ref,
             w2_ref, b2_ref, w3_ref, b3_ref, o_ref) = refs

        # Layer 1: shared lane-folded matmul; the ob/ac split fuses the concat.
        h = jnp.dot(ob_ref[...], w1o_ref[...],
                    preferred_element_type=jnp.float32, precision=precision)
        if has_ac:
            h = h + jnp.dot(ac_ref[...], w1a_ref[...],
                            preferred_element_type=jnp.float32, precision=precision)
        h = jnp.maximum(h + b1_ref[...], 0.0)          # bias + ReLU in f32

        cdt = w2_ref.dtype
        cols = []
        for e in range(E):                              # static unroll over critics
            he = h[:, e * H:(e + 1) * H].astype(cdt)    # lane slice of layer-1 output
            h2 = jnp.dot(he, w2_ref[e],
                         preferred_element_type=jnp.float32, precision=precision)
            h2 = jnp.maximum(h2 + b2_ref[:, e * H:(e + 1) * H], 0.0)
            # Output width is 1 per critic -> VPU multiply + lane reduction instead of
            # an almost-empty MXU matmul.
            qe = jnp.sum(h2 * w3_ref[e].astype(jnp.float32), axis=-1, keepdims=True)
            cols.append(qe)
        q = jnp.concatenate(cols, axis=-1) + b3_ref[...]
        o_ref[...] = q.astype(o_ref.dtype)

    return kernel


# --------------------------------------------------------------------------- #
# Tiling / VMEM policy
# --------------------------------------------------------------------------- #
def _num_tensorcores():
    """2 TensorCores per chip on v7x (grid needs >= 2 steps to feed both), else 1."""
    try:
        kind = jax.devices()[0].device_kind.lower()
    except Exception:
        return 1
    return 2 if "v7" in kind else 1


_TILE_CANDIDATES = (2048, 1024, 512, 256, 128, 64, 32, 16, 8)


def _pick_batch_tile(B, row_bytes, resident_bytes, n_cores):
    """Largest batch tile such that (a) B % tb == 0, (b) the per-step VMEM working set
    stays inside a conservative budget, (c) there are >= n_cores grid steps whenever the
    batch is big enough to split legally."""
    budget = max((24 << 20) - resident_bytes, 4 << 20)
    cands = [t for t in _TILE_CANDIDATES if t < B and B % t == 0]
    if B * row_bytes <= budget and (n_cores <= 1 or not cands):
        return B                                    # single block, zero grid overhead
    for t in cands:
        if t * row_bytes > budget:
            continue
        if n_cores > 1 and B // t < n_cores and t != cands[-1]:
            continue                                # keep >= 2 steps for v7x megacore
        return t
    return cands[-1] if cands else B


# --------------------------------------------------------------------------- #
# Host-side weight packing (one-time, outside the kernel)
# --------------------------------------------------------------------------- #
def pack_critic_params(params, ob_dim=None):
    """Stacked per-critic params -> kernel-layout packed params.

    Input  : w1 (E,D,H), b1 (E,1,H), w2 (E,H,H), b2 (E,1,H), w3 (E,H,1), b3 (E,1,1)
    Output : w1_ob (Dob, E*H), w1_ac (Dac, E*H) | None, b1 (1, E*H),
             w2 (E, H, H) stacked, b2 (1, E*H), w3 (E, 1, H), b3 (1, E)
    """
    w1, b1, w2, b2, w3, b3 = params
    E, D, H = w1.shape
    w1p = jnp.transpose(w1, (1, 0, 2)).reshape(D, E * H)   # lane-fold the critics
    if ob_dim is None or ob_dim == D:
        w1o, w1a = w1p, None
    else:
        w1o, w1a = w1p[:ob_dim], w1p[ob_dim:]
    b1p = b1.reshape(1, E * H)
    b2p = b2.reshape(1, E * H)
    w3p = jnp.transpose(w3, (0, 2, 1))                     # (E, 1, H)
    b3p = b3.reshape(1, E)
    return (w1o, w1a, b1p, w2, b2p, w3p, b3p)


# --------------------------------------------------------------------------- #
# Forward wrapper
# --------------------------------------------------------------------------- #
def critic_forward(ob, ac, packed_params, compute_dtype=None):
    """Pallas implementation of Critic.forward(ob, ac).

    Returns a (B, E) f32 array whose column e equals the original module's e-th (B, 1)
    Q output (squeezed).  For E == 1 the (B, 1) result matches the single-critic return.
    """
    w1o, w1a, b1p, w2s, b2p, w3p, b3p = packed_params
    E, H, _ = w2s.shape
    EH = E * H
    Dob = w1o.shape[0]

    ob_f = ob.reshape(ob.shape[0], -1)                     # identity/flatten encoder
    B = ob_f.shape[0]
    assert ob_f.shape[1] == Dob
    has_ac = ac is not None
    if has_ac:
        assert w1a is not None, "pack_critic_params needs ob_dim when actions are used"
        ac_f = ac.reshape(B, -1)
        Dac = w1a.shape[0]
        assert ac_f.shape[1] == Dac
    else:
        ac_f, Dac = None, 0
    Dtot = Dob + Dac

    # bf16 feeds the MXU natively on v5e/v6e/v7x; keep f32 for tiny / exactness shapes.
    if compute_dtype is None:
        compute_dtype = jnp.bfloat16 if (EH >= 512 or B >= 256) else jnp.float32
    cd = jax.dtypes.canonicalize_dtype(compute_dtype)
    precision = (jax.lax.Precision.HIGHEST if cd == jnp.float32
                 else jax.lax.Precision.DEFAULT)
    in_size = cd.itemsize

    ob_c = ob_f.astype(cd)
    ac_c = ac_f.astype(cd) if has_ac else None
    w1o_c = w1o.astype(cd)
    w1a_c = w1a.astype(cd) if has_ac else None
    w2_c = w2s.astype(cd)
    w3_c = w3p.astype(cd)
    b1_f = b1p.astype(jnp.float32)
    b2_f = b2p.astype(jnp.float32)
    b3_f = b3p.astype(jnp.float32)

    # --- VMEM-budgeted batch tiling + explicit scoped-VMEM limit ---------------------
    weight_bytes = (Dtot * EH + E * H * H + E * H) * in_size + (2 * EH + E) * 4
    # per batch-row working set: double-buffered inputs/output + f32 h1/h2 temporaries
    row_bytes = 2 * Dtot * in_size + 2 * E * 4 + EH * 4 + 2 * H * 4
    tb = _pick_batch_tile(B, row_bytes, 2 * weight_bytes, _num_tensorcores())
    nb = B // tb
    vmem_limit = int(min(max(3 * (2 * weight_bytes + tb * row_bytes) // 2, 32 << 20),
                         56 << 20))

    flops = 2 * B * (Dtot * EH + E * H * H + E * H)
    bytes_accessed = B * Dtot * in_size + weight_bytes + B * E * 4
    cost = pl.CostEstimate(flops=int(flops), transcendentals=0,
                           bytes_accessed=int(bytes_accessed))

    kernel = _make_critic_kernel(has_ac, E, H, precision)

    def _run(single_buffer_weights):
        def const_spec(shape):
            imap = lambda i: (0,) * len(shape)          # noqa: E731  (grid-invariant)
            if single_buffer_weights:
                # Weights are fetched once; single buffering halves their VMEM cost.
                return pl.BlockSpec(shape, imap, pipeline_mode=pl.Buffered(1))
            return pl.BlockSpec(shape, imap)

        x_args = [ob_c] + ([ac_c] if has_ac else [])
        x_specs = [pl.BlockSpec((tb, Dob), lambda i: (i, 0))]
        if has_ac:
            x_specs.append(pl.BlockSpec((tb, Dac), lambda i: (i, 0)))
        w_args = ([w1o_c] + ([w1a_c] if has_ac else [])
                  + [b1_f, w2_c, b2_f, w3_c, b3_f])
        w_specs = [const_spec(a.shape) for a in w_args]

        return pl.pallas_call(
            kernel,
            out_shape=jax.ShapeDtypeStruct((B, E), jnp.float32),
            grid=(nb,),
            in_specs=x_specs + w_specs,
            out_specs=pl.BlockSpec((tb, E), lambda i: (i, 0)),
            compiler_params=pltpu.CompilerParams(
                dimension_semantics=("parallel",),
                vmem_limit_bytes=vmem_limit),
            cost_estimate=cost,
        )(*(x_args + w_args))

    try:
        out = _run(True)
    except Exception:
        # pipeline_mode=pl.Buffered(1) not supported by this Pallas build:
        # fall back to default (double-buffered) constant weight blocks.
        out = _run(False)
    return out  # (B, E); (B, 1) when E == 1 — matches original single-critic return


# --------------------------------------------------------------------------- #
# Init + pure-JAX reference
# --------------------------------------------------------------------------- #
def init_critic_params(key, ensemble, input_dim, hidden_dim):
    """Deterministic init mimicking torch.nn.Linear (U(-1/sqrt(fan_in), +1/sqrt(fan_in)))."""
    ks = jax.random.split(key, 6)

    def unif(k, shape, fan_in):
        bound = 1.0 / jnp.sqrt(jnp.asarray(fan_in, jnp.float32))
        return jax.random.uniform(k, shape, jnp.float32, -bound, bound)

    w1 = unif(ks[0], (ensemble, input_dim, hidden_dim), input_dim)
    b1 = unif(ks[1], (ensemble, 1, hidden_dim), input_dim)
    w2 = unif(ks[2], (ensemble, hidden_dim, hidden_dim), hidden_dim)
    b2 = unif(ks[3], (ensemble, 1, hidden_dim), hidden_dim)
    w3 = unif(ks[4], (ensemble, hidden_dim, 1), hidden_dim)
    b3 = unif(ks[5], (ensemble, 1, 1), hidden_dim)
    return (w1, b1, w2, b2, w3, b3)


def critic_reference(ob, ac, params):
    """Pure-JAX reference; returns stacked (B, E)."""
    feat = ob.reshape(ob.shape[0], -1)
    x = jnp.concatenate([feat, ac.reshape(ac.shape[0], -1)], axis=-1)
    w1, b1, w2, b2, w3, b3 = params
    outs = []
    for e in range(w1.shape[0]):
        h = jnp.maximum(x @ w1[e] + b1[e], 0.0)
        h = jnp.maximum(h @ w2[e] + b2[e], 0.0)
        outs.append(h @ w3[e] + b3[e])               # (B, 1) each
    return jnp.concatenate(outs, axis=-1)            # (B, E)


# --------------------------------------------------------------------------- #
if __name__ == "__main__":
    # Small, forward-consistent shapes:
    #   batch=8, ob_dim=16 (state observation), ac_dim=4,
    #   cfg.critic_ensemble=2, cfg.critic_mlp_dim=[32, 32], relu activation.
    B, OB_DIM, AC_DIM, H, E = 8, 16, 4, 32, 2
    D = OB_DIM + AC_DIM

    key = jax.random.PRNGKey(0)
    k_ob, k_ac, k_params = jax.random.split(key, 3)
    ob = jax.random.normal(k_ob, (B, OB_DIM), jnp.float32)
    ac = jax.random.normal(k_ac, (B, AC_DIM), jnp.float32)

    params = init_critic_params(k_params, E, D, H)
    packed = pack_critic_params(params, ob_dim=OB_DIM)

    ref = critic_reference(ob, ac, params)

    # Exact f32 path (what tiny shapes auto-select).
    q32 = jax.block_until_ready(critic_forward(ob, ac, packed, compute_dtype=jnp.float32))
    assert q32.shape == (B, E)
    assert jnp.allclose(q32, ref, atol=1e-4, rtol=1e-4)

    # bf16 MXU path (what production shapes auto-select) — relaxed tolerance.
    qbf = jax.block_until_ready(critic_forward(ob, ac, packed, compute_dtype=jnp.bfloat16))
    assert qbf.shape == (B, E)
    assert jnp.allclose(qbf, ref, atol=1e-1, rtol=1e-1)

    print("KERNEL_OK")
</pallas_src>

<mosaic_0001>
module attributes {stable_mosaic.version = 11 : i64} {
  func.func @kernel(%arg0: i32, %arg1: memref<8x16xf32, #tpu.memory_space<vmem>>, %arg2: memref<8x4xf32, #tpu.memory_space<vmem>>, %arg3: memref<16x64xf32, #tpu.memory_space<vmem>>, %arg4: memref<4x64xf32, #tpu.memory_space<vmem>>, %arg5: memref<1x64xf32, #tpu.memory_space<vmem>>, %arg6: memref<2x32x32xf32, #tpu.memory_space<vmem>>, %arg7: memref<1x64xf32, #tpu.memory_space<vmem>>, %arg8: memref<2x1x32xf32, #tpu.memory_space<vmem>>, %arg9: memref<1x2xf32, #tpu.memory_space<vmem>>, %arg10: memref<8x2xf32, #tpu.memory_space<vmem>>) attributes {dimension_semantics = [#tpu.dimension_semantics<parallel>], iteration_bounds = array<i64: 1>, scalar_prefetch = 0 : i64, scratch_operands = 0 : i64, tpu.core_type = #tpu.core_type<tc>, window_params = [{transform_indices = @transform_0, window_bounds = array<i64: 8, 16>}, {transform_indices = @transform_1, window_bounds = array<i64: 8, 4>}, {pipeline_mode = #tpu.pipeline_mode<synchronous>, transform_indices = @transform_2, window_bounds = array<i64: 16, 64>}, {pipeline_mode = #tpu.pipeline_mode<synchronous>, transform_indices = @transform_3, window_bounds = array<i64: 4, 64>}, {pipeline_mode = #tpu.pipeline_mode<synchronous>, transform_indices = @transform_4, window_bounds = array<i64: 1, 64>}, {pipeline_mode = #tpu.pipeline_mode<synchronous>, transform_indices = @transform_5, window_bounds = array<i64: 2, 32, 32>}, {pipeline_mode = #tpu.pipeline_mode<synchronous>, transform_indices = @transform_6, window_bounds = array<i64: 1, 64>}, {pipeline_mode = #tpu.pipeline_mode<synchronous>, transform_indices = @transform_7, window_bounds = array<i64: 2, 1, 32>}, {pipeline_mode = #tpu.pipeline_mode<synchronous>, transform_indices = @transform_8, window_bounds = array<i64: 1, 2>}, {transform_indices = @transform_9, window_bounds = array<i64: 8, 2>}]} {
    %c0 = arith.constant 0 : index
    %c0_0 = arith.constant 0 : index
    %0 = vector.load %arg1[%c0, %c0_0] : memref<8x16xf32, #tpu.memory_space<vmem>>, vector<8x16xf32>
    %c0_1 = arith.constant 0 : index
    %c0_2 = arith.constant 0 : index
    %1 = vector.load %arg3[%c0_1, %c0_2] : memref<16x64xf32, #tpu.memory_space<vmem>>, vector<16x64xf32>
    %cst = arith.constant dense<0.000000e+00> : vector<8x64xf32>
    %2 = tpu.matmul %0, %1, %cst {dimension_numbers = #tpu.dot_dimension_numbers<[1], [0], [0], [1], [0, 0, 1, 1], [], []>, precision = #tpu.contract_precision<fp32>} : vector<8x16xf32>, vector<16x64xf32>, vector<8x64xf32> -> vector<8x64xf32>
    %c0_3 = arith.constant 0 : index
    %c0_4 = arith.constant 0 : index
    %3 = vector.load %arg2[%c0_3, %c0_4] : memref<8x4xf32, #tpu.memory_space<vmem>>, vector<8x4xf32>
    %c0_5 = arith.constant 0 : index
    %c0_6 = arith.constant 0 : index
    %4 = vector.load %arg4[%c0_5, %c0_6] : memref<4x64xf32, #tpu.memory_space<vmem>>, vector<4x64xf32>
    %cst_7 = arith.constant dense<0.000000e+00> : vector<8x64xf32>
    %5 = tpu.matmul %3, %4, %cst_7 {dimension_numbers = #tpu.dot_dimension_numbers<[1], [0], [0], [1], [0, 0, 1, 1], [], []>, precision = #tpu.contract_precision<fp32>} : vector<8x4xf32>, vector<4x64xf32>, vector<8x64xf32> -> vector<8x64xf32>
    %6 = arith.addf %2, %5 : vector<8x64xf32>
    %c0_8 = arith.constant 0 : index
    %c0_9 = arith.constant 0 : index
    %7 = vector.load %arg5[%c0_8, %c0_9] : memref<1x64xf32, #tpu.memory_space<vmem>>, vector<1x64xf32>
    %8 = vector.broadcast %7 : vector<1x64xf32> to vector<8x64xf32>
    %9 = arith.addf %6, %8 : vector<8x64xf32>
    %cst_10 = arith.constant 0.000000e+00 : f32
    %10 = vector.broadcast %cst_10 : f32 to vector<8x64xf32>
    %11 = arith.maximumf %9, %10 : vector<8x64xf32>
    %12 = vector.extract_strided_slice %11 {offsets = [0, 0], sizes = [8, 32], strides = [1, 1]} : vector<8x64xf32> to vector<8x32xf32>
    %c0_11 = arith.constant 0 : index
    %c0_12 = arith.constant 0 : index
    %c0_13 = arith.constant 0 : index
    %13 = vector.load %arg6[%c0_11, %c0_12, %c0_13] : memref<2x32x32xf32, #tpu.memory_space<vmem>>, vector<1x32x32xf32>
    %14 = vector.shape_cast %13 : vector<1x32x32xf32> to vector<32x32xf32>
    %cst_14 = arith.constant dense<0.000000e+00> : vector<8x32xf32>
    %15 = tpu.matmul %12, %14, %cst_14 {dimension_numbers = #tpu.dot_dimension_numbers<[1], [0], [0], [1], [0, 0, 1, 1], [], []>, precision = #tpu.contract_precision<fp32>} : vector<8x32xf32>, vector<32x32xf32>, vector<8x32xf32> -> vector<8x32xf32>
    %c0_15 = arith.constant 0 : index
    %c0_16 = arith.constant 0 : index
    %16 = vector.load %arg7[%c0_15, %c0_16] : memref<1x64xf32, #tpu.memory_space<vmem>>, vector<1x32xf32>
    %17 = vector.broadcast %16 : vector<1x32xf32> to vector<8x32xf32>
    %18 = arith.addf %15, %17 : vector<8x32xf32>
    %cst_17 = arith.constant 0.000000e+00 : f32
    %19 = vector.broadcast %cst_17 : f32 to vector<8x32xf32>
    %20 = arith.maximumf %18, %19 : vector<8x32xf32>
    %c0_18 = arith.constant 0 : index
    %c0_19 = arith.constant 0 : index
    %c0_20 = arith.constant 0 : index
    %21 = vector.load %arg8[%c0_18, %c0_19, %c0_20] : memref<2x1x32xf32, #tpu.memory_space<vmem>>, vector<1x1x32xf32>
    %22 = vector.shape_cast %21 : vector<1x1x32xf32> to vector<1x32xf32>
    %23 = vector.broadcast %22 : vector<1x32xf32> to vector<8x32xf32>
    %24 = arith.mulf %20, %23 : vector<8x32xf32>
    %cst_21 = arith.constant dense<0.000000e+00> : vector<8xf32>
    %25 = vector.multi_reduction <add>, %24, %cst_21 [1] : vector<8x32xf32> to vector<8xf32>
    %26 = vector.shape_cast %25 : vector<8xf32> to vector<8x1xf32>
    %27 = vector.extract_strided_slice %11 {offsets = [0, 32], sizes = [8, 32], strides = [1, 1]} : vector<8x64xf32> to vector<8x32xf32>
    %c1 = arith.constant 1 : index
    %c0_22 = arith.constant 0 : index
    %c0_23 = arith.constant 0 : index
    %28 = vector.load %arg6[%c1, %c0_22, %c0_23] : memref<2x32x32xf32, #tpu.memory_space<vmem>>, vector<1x32x32xf32>
    %29 = vector.shape_cast %28 : vector<1x32x32xf32> to vector<32x32xf32>
    %cst_24 = arith.constant dense<0.000000e+00> : vector<8x32xf32>
    %30 = tpu.matmul %27, %29, %cst_24 {dimension_numbers = #tpu.dot_dimension_numbers<[1], [0], [0], [1], [0, 0, 1, 1], [], []>, precision = #tpu.contract_precision<fp32>} : vector<8x32xf32>, vector<32x32xf32>, vector<8x32xf32> -> vector<8x32xf32>
    %c0_25 = arith.constant 0 : index
    %c32 = arith.constant 32 : index
    %31 = vector.load %arg7[%c0_25, %c32] : memref<1x64xf32, #tpu.memory_space<vmem>>, vector<1x32xf32>
    %32 = vector.broadcast %31 : vector<1x32xf32> to vector<8x32xf32>
    %33 = arith.addf %30, %32 : vector<8x32xf32>
    %cst_26 = arith.constant 0.000000e+00 : f32
    %34 = vector.broadcast %cst_26 : f32 to vector<8x32xf32>
    %35 = arith.maximumf %33, %34 : vector<8x32xf32>
    %c1_27 = arith.constant 1 : index
    %c0_28 = arith.constant 0 : index
    %c0_29 = arith.constant 0 : index
    %36 = vector.load %arg8[%c1_27, %c0_28, %c0_29] : memref<2x1x32xf32, #tpu.memory_space<vmem>>, vector<1x1x32xf32>
    %37 = vector.shape_cast %36 : vector<1x1x32xf32> to vector<1x32xf32>
    %38 = vector.broadcast %37 : vector<1x32xf32> to vector<8x32xf32>
    %39 = arith.mulf %35, %38 : vector<8x32xf32>
    %cst_30 = arith.constant dense<0.000000e+00> : vector<8xf32>
    %40 = vector.multi_reduction <add>, %39, %cst_30 [1] : vector<8x32xf32> to vector<8xf32>
    %41 = vector.shape_cast %40 : vector<8xf32> to vector<8x1xf32>
    %42 = tpu.concatenate %26, %41 in 1 : vector<8x1xf32>, vector<8x1xf32> -> vector<8x2xf32>
    %c0_31 = arith.constant 0 : index
    %c0_32 = arith.constant 0 : index
    %43 = vector.load %arg9[%c0_31, %c0_32] : memref<1x2xf32, #tpu.memory_space<vmem>>, vector<1x2xf32>
    %44 = vector.broadcast %43 : vector<1x2xf32> to vector<8x2xf32>
    %45 = arith.addf %42, %44 : vector<8x2xf32>
    %c0_33 = arith.constant 0 : index
    %c0_34 = arith.constant 0 : index
    %46 = vector.load %arg10[%c0_33, %c0_34] : memref<8x2xf32, #tpu.memory_space<vmem>>, vector<8x2xf32>
    tpu.vector_store %arg10[%c0_33, %c0_34], %45 {strides = array<i32>} : memref<8x2xf32, #tpu.memory_space<vmem>>, vector<8x2xf32>,
    return
  }
  func.func @transform_0(%arg0: i32) -> (i32, i32) {
    %c0_i32 = arith.constant 0 : i32
    %c0_i32_0 = arith.constant 0 : i32
    return %arg0, %c0_i32 : i32, i32
  }
  func.func @transform_1(%arg0: i32) -> (i32, i32) {
    %c0_i32 = arith.constant 0 : i32
    %c0_i32_0 = arith.constant 0 : i32
    return %arg0, %c0_i32 : i32, i32
  }
  func.func @transform_2(%arg0: i32) -> (i32, i32) {
    %c0_i32 = arith.constant 0 : i32
    %c0_i32_0 = arith.constant 0 : i32
    %c0_i32_1 = arith.constant 0 : i32
    return %c0_i32, %c0_i32_0 : i32, i32
  }
  func.func @transform_3(%arg0: i32) -> (i32, i32) {
    %c0_i32 = arith.constant 0 : i32
    %c0_i32_0 = arith.constant 0 : i32
    %c0_i32_1 = arith.constant 0 : i32
    return %c0_i32, %c0_i32_0 : i32, i32
  }
  func.func @transform_4(%arg0: i32) -> (i32, i32) {
    %c0_i32 = arith.constant 0 : i32
    %c0_i32_0 = arith.constant 0 : i32
    %c0_i32_1 = arith.constant 0 : i32
    return %c0_i32, %c0_i32_0 : i32, i32
  }
  func.func @transform_5(%arg0: i32) -> (i32, i32, i32) {
    %c0_i32 = arith.constant 0 : i32
    %c0_i32_0 = arith.constant 0 : i32
    %c0_i32_1 = arith.constant 0 : i32
    %c0_i32_2 = arith.constant 0 : i32
    return %c0_i32, %c0_i32_0, %c0_i32_1 : i32, i32, i32
  }
  func.func @transform_6(%arg0: i32) -> (i32, i32) {
    %c0_i32 = arith.constant 0 : i32
    %c0_i32_0 = arith.constant 0 : i32
    %c0_i32_1 = arith.constant 0 : i32
    return %c0_i32, %c0_i32_0 : i32, i32
  }
  func.func @transform_7(%arg0: i32) -> (i32, i32, i32) {
    %c0_i32 = arith.constant 0 : i32
    %c0_i32_0 = arith.constant 0 : i32
    %c0_i32_1 = arith.constant 0 : i32
    %c0_i32_2 = arith.constant 0 : i32
    return %c0_i32, %c0_i32_0, %c0_i32_1 : i32, i32, i32
  }
  func.func @transform_8(%arg0: i32) -> (i32, i32) {
    %c0_i32 = arith.constant 0 : i32
    %c0_i32_0 = arith.constant 0 : i32
    %c0_i32_1 = arith.constant 0 : i32
    return %c0_i32, %c0_i32_0 : i32, i32
  }
  func.func @transform_9(%arg0: i32) -> (i32, i32) {
    %c0_i32 = arith.constant 0 : i32
    %c0_i32_0 = arith.constant 0 : i32
    return %arg0, %c0_i32 : i32, i32
  }
}

module attributes {stable_mosaic.version = 11 : i64} {
  func.func @kernel(%arg0: i32, %arg1: memref<8x16xf32, #tpu.memory_space<vmem>>, %arg2: memref<8x4xf32, #tpu.memory_space<vmem>>, %arg3: memref<16x64xf32, #tpu.memory_space<vmem>>, %arg4: memref<4x64xf32, #tpu.memory_space<vmem>>, %arg5: memref<1x64xf32, #tpu.memory_space<vmem>>, %arg6: memref<2x32x32xf32, #tpu.memory_space<vmem>>, %arg7: memref<1x64xf32, #tpu.memory_space<vmem>>, %arg8: memref<2x1x32xf32, #tpu.memory_space<vmem>>, %arg9: memref<1x2xf32, #tpu.memory_space<vmem>>, %arg10: memref<8x2xf32, #tpu.memory_space<vmem>>) attributes {dimension_semantics = [#tpu.dimension_semantics<parallel>], iteration_bounds = array<i64: 1>, scalar_prefetch = 0 : i64, scratch_operands = 0 : i64, tpu.core_type = #tpu.core_type<tc>, window_params = [{transform_indices = @transform_0, window_bounds = array<i64: 8, 16>}, {transform_indices = @transform_1, window_bounds = array<i64: 8, 4>}, {pipeline_mode = #tpu.pipeline_mode<synchronous>, transform_indices = @transform_2, window_bounds = array<i64: 16, 64>}, {pipeline_mode = #tpu.pipeline_mode<synchronous>, transform_indices = @transform_3, window_bounds = array<i64: 4, 64>}, {pipeline_mode = #tpu.pipeline_mode<synchronous>, transform_indices = @transform_4, window_bounds = array<i64: 1, 64>}, {pipeline_mode = #tpu.pipeline_mode<synchronous>, transform_indices = @transform_5, window_bounds = array<i64: 2, 32, 32>}, {pipeline_mode = #tpu.pipeline_mode<synchronous>, transform_indices = @transform_6, window_bounds = array<i64: 1, 64>}, {pipeline_mode = #tpu.pipeline_mode<synchronous>, transform_indices = @transform_7, window_bounds = array<i64: 2, 1, 32>}, {pipeline_mode = #tpu.pipeline_mode<synchronous>, transform_indices = @transform_8, window_bounds = array<i64: 1, 2>}, {transform_indices = @transform_9, window_bounds = array<i64: 8, 2>}]} {
    %c0 = arith.constant 0 : index
    %c0_0 = arith.constant 0 : index
    %0 = vector.load %arg1[%c0, %c0_0] : memref<8x16xf32, #tpu.memory_space<vmem>>, vector<8x16xf32>
    %c0_1 = arith.constant 0 : index
    %c0_2 = arith.constant 0 : index
    %1 = vector.load %arg3[%c0_1, %c0_2] : memref<16x64xf32, #tpu.memory_space<vmem>>, vector<16x64xf32>
    %cst = arith.constant dense<0.000000e+00> : vector<8x64xf32>
    %2 = tpu.matmul %0, %1, %cst {dimension_numbers = #tpu.dot_dimension_numbers<[1], [0], [0], [1], [0, 0, 1, 1], [], []>, precision = #tpu.contract_precision<fp32>} : vector<8x16xf32>, vector<16x64xf32>, vector<8x64xf32> -> vector<8x64xf32>
    %c0_3 = arith.constant 0 : index
    %c0_4 = arith.constant 0 : index
    %3 = vector.load %arg2[%c0_3, %c0_4] : memref<8x4xf32, #tpu.memory_space<vmem>>, vector<8x4xf32>
    %c0_5 = arith.constant 0 : index
    %c0_6 = arith.constant 0 : index
    %4 = vector.load %arg4[%c0_5, %c0_6] : memref<4x64xf32, #tpu.memory_space<vmem>>, vector<4x64xf32>
    %cst_7 = arith.constant dense<0.000000e+00> : vector<8x64xf32>
    %5 = tpu.matmul %3, %4, %cst_7 {dimension_numbers = #tpu.dot_dimension_numbers<[1], [0], [0], [1], [0, 0, 1, 1], [], []>, precision = #tpu.contract_precision<fp32>} : vector<8x4xf32>, vector<4x64xf32>, vector<8x64xf32> -> vector<8x64xf32>
    %6 = arith.addf %2, %5 : vector<8x64xf32>
    %c0_8 = arith.constant 0 : index
    %c0_9 = arith.constant 0 : index
    %7 = vector.load %arg5[%c0_8, %c0_9] : memref<1x64xf32, #tpu.memory_space<vmem>>, vector<1x64xf32>
    %8 = vector.broadcast %7 : vector<1x64xf32> to vector<8x64xf32>
    %9 = arith.addf %6, %8 : vector<8x64xf32>
    %cst_10 = arith.constant 0.000000e+00 : f32
    %10 = vector.broadcast %cst_10 : f32 to vector<8x64xf32>
    %11 = arith.maximumf %9, %10 : vector<8x64xf32>
    %12 = vector.extract_strided_slice %11 {offsets = [0, 0], sizes = [8, 32], strides = [1, 1]} : vector<8x64xf32> to vector<8x32xf32>
    %c0_11 = arith.constant 0 : index
    %c0_12 = arith.constant 0 : index
    %c0_13 = arith.constant 0 : index
    %13 = vector.load %arg6[%c0_11, %c0_12, %c0_13] : memref<2x32x32xf32, #tpu.memory_space<vmem>>, vector<1x32x32xf32>
    %14 = vector.shape_cast %13 : vector<1x32x32xf32> to vector<32x32xf32>
    %cst_14 = arith.constant dense<0.000000e+00> : vector<8x32xf32>
    %15 = tpu.matmul %12, %14, %cst_14 {dimension_numbers = #tpu.dot_dimension_numbers<[1], [0], [0], [1], [0, 0, 1, 1], [], []>, precision = #tpu.contract_precision<fp32>} : vector<8x32xf32>, vector<32x32xf32>, vector<8x32xf32> -> vector<8x32xf32>
    %c0_15 = arith.constant 0 : index
    %c0_16 = arith.constant 0 : index
    %16 = vector.load %arg7[%c0_15, %c0_16] : memref<1x64xf32, #tpu.memory_space<vmem>>, vector<1x32xf32>
    %17 = vector.broadcast %16 : vector<1x32xf32> to vector<8x32xf32>
    %18 = arith.addf %15, %17 : vector<8x32xf32>
    %cst_17 = arith.constant 0.000000e+00 : f32
    %19 = vector.broadcast %cst_17 : f32 to vector<8x32xf32>
    %20 = arith.maximumf %18, %19 : vector<8x32xf32>
    %c0_18 = arith.constant 0 : index
    %c0_19 = arith.constant 0 : index
    %c0_20 = arith.constant 0 : index
    %21 = vector.load %arg8[%c0_18, %c0_19, %c0_20] : memref<2x1x32xf32, #tpu.memory_space<vmem>>, vector<1x1x32xf32>
    %22 = vector.shape_cast %21 : vector<1x1x32xf32> to vector<1x32xf32>
    %23 = vector.broadcast %22 : vector<1x32xf32> to vector<8x32xf32>
    %24 = arith.mulf %20, %23 : vector<8x32xf32>
    %cst_21 = arith.constant dense<0.000000e+00> : vector<8xf32>
    %25 = vector.multi_reduction <add>, %24, %cst_21 [1] : vector<8x32xf32> to vector<8xf32>
    %26 = vector.shape_cast %25 : vector<8xf32> to vector<8x1xf32>
    %27 = vector.extract_strided_slice %11 {offsets = [0, 32], sizes = [8, 32], strides = [1, 1]} : vector<8x64xf32> to vector<8x32xf32>
    %c1 = arith.constant 1 : index
    %c0_22 = arith.constant 0 : index
    %c0_23 = arith.constant 0 : index
    %28 = vector.load %arg6[%c1, %c0_22, %c0_23] : memref<2x32x32xf32, #tpu.memory_space<vmem>>, vector<1x32x32xf32>
    %29 = vector.shape_cast %28 : vector<1x32x32xf32> to vector<32x32xf32>
    %cst_24 = arith.constant dense<0.000000e+00> : vector<8x32xf32>
    %30 = tpu.matmul %27, %29, %cst_24 {dimension_numbers = #tpu.dot_dimension_numbers<[1], [0], [0], [1], [0, 0, 1, 1], [], []>, precision = #tpu.contract_precision<fp32>} : vector<8x32xf32>, vector<32x32xf32>, vector<8x32xf32> -> vector<8x32xf32>
    %c0_25 = arith.constant 0 : index
    %c32 = arith.constant 32 : index
    %31 = vector.load %arg7[%c0_25, %c32] : memref<1x64xf32, #tpu.memory_space<vmem>>, vector<1x32xf32>
    %32 = vector.broadcast %31 : vector<1x32xf32> to vector<8x32xf32>
    %33 = arith.addf %30, %32 : vector<8x32xf32>
    %cst_26 = arith.constant 0.000000e+00 : f32
    %34 = vector.broadcast %cst_26 : f32 to vector<8x32xf32>
    %35 = arith.maximumf %33, %34 : vector<8x32xf32>
    %c1_27 = arith.constant 1 : index
    %c0_28 = arith.constant 0 : index
    %c0_29 = arith.constant 0 : index
    %36 = vector.load %arg8[%c1_27, %c0_28, %c0_29] : memref<2x1x32xf32, #tpu.memory_space<vmem>>, vector<1x1x32xf32>
    %37 = vector.shape_cast %36 : vector<1x1x32xf32> to vector<1x32xf32>
    %38 = vector.broadcast %37 : vector<1x32xf32> to vector<8x32xf32>
    %39 = arith.mulf %35, %38 : vector<8x32xf32>
    %cst_30 = arith.constant dense<0.000000e+00> : vector<8xf32>
    %40 = vector.multi_reduction <add>, %39, %cst_30 [1] : vector<8x32xf32> to vector<8xf32>
    %41 = vector.shape_cast %40 : vector<8xf32> to vector<8x1xf32>
    %42 = tpu.concatenate %26, %41 in 1 : vector<8x1xf32>, vector<8x1xf32> -> vector<8x2xf32>
    %c0_31 = arith.constant 0 : index
    %c0_32 = arith.constant 0 : index
    %43 = vector.load %arg9[%c0_31, %c0_32] : memref<1x2xf32, #tpu.memory_space<vmem>>, vector<1x2xf32>
    %44 = vector.broadcast %43 : vector<1x2xf32> to vector<8x2xf32>
    %45 = arith.addf %42, %44 : vector<8x2xf32>
    %c0_33 = arith.constant 0 : index
    %c0_34 = arith.constant 0 : index
    %46 = vector.load %arg10[%c0_33, %c0_34] : memref<8x2xf32, #tpu.memory_space<vmem>>, vector<8x2xf32>
    tpu.vector_store %arg10[%c0_33, %c0_34], %45 {strides = array<i32>} : memref<8x2xf32, #tpu.memory_space<vmem>>, vector<8x2xf32>,
    return
  }
  func.func @transform_0(%arg0: i32) -> (i32, i32) {
    %c0_i32 = arith.constant 0 : i32
    %c0_i32_0 = arith.constant 0 : i32
    return %arg0, %c0_i32 : i32, i32
  }
  func.func @transform_1(%arg0: i32) -> (i32, i32) {
    %c0_i32 = arith.constant 0 : i32
    %c0_i32_0 = arith.constant 0 : i32
    return %arg0, %c0_i32 : i32, i32
  }
  func.func @transform_2(%arg0: i32) -> (i32, i32) {
    %c0_i32 = arith.constant 0 : i32
    %c0_i32_0 = arith.constant 0 : i32
    %c0_i32_1 = arith.constant 0 : i32
    return %c0_i32, %c0_i32_0 : i32, i32
  }
  func.func @transform_3(%arg0: i32) -> (i32, i32) {
    %c0_i32 = arith.constant 0 : i32
    %c0_i32_0 = arith.constant 0 : i32
    %c0_i32_1 = arith.constant 0 : i32
    return %c0_i32, %c0_i32_0 : i32, i32
  }
  func.func @transform_4(%arg0: i32) -> (i32, i32) {
    %c0_i32 = arith.constant 0 : i32
    %c0_i32_0 = arith.constant 0 : i32
    %c0_i32_1 = arith.constant 0 : i32
    return %c0_i32, %c0_i32_0 : i32, i32
  }
  func.func @transform_5(%arg0: i32) -> (i32, i32, i32) {
    %c0_i32 = arith.constant 0 : i32
    %c0_i32_0 = arith.constant 0 : i32
    %c0_i32_1 = arith.constant 0 : i32
    %c0_i32_2 = arith.constant 0 : i32
    return %c0_i32, %c0_i32_0, %c0_i32_1 : i32, i32, i32
  }
  func.func @transform_6(%arg0: i32) -> (i32, i32) {
    %c0_i32 = arith.constant 0 : i32
    %c0_i32_0 = arith.constant 0 : i32
    %c0_i32_1 = arith.constant 0 : i32
    return %c0_i32, %c0_i32_0 : i32, i32
  }
  func.func @transform_7(%arg0: i32) -> (i32, i32, i32) {
    %c0_i32 = arith.constant 0 : i32
    %c0_i32_0 = arith.constant 0 : i32
    %c0_i32_1 = arith.constant 0 : i32
    %c0_i32_2 = arith.constant 0 : i32
    return %c0_i32, %c0_i32_0, %c0_i32_1 : i32, i32, i32
  }
  func.func @transform_8(%arg0: i32) -> (i32, i32) {
    %c0_i32 = arith.constant 0 : i32
    %c0_i32_0 = arith.constant 0 : i32
    %c0_i32_1 = arith.constant 0 : i32
    return %c0_i32, %c0_i32_0 : i32, i32
  }
  func.func @transform_9(%arg0: i32) -> (i32, i32) {
    %c0_i32 = arith.constant 0 : i32
    %c0_i32_0 = arith.constant 0 : i32
    return %arg0, %c0_i32 : i32, i32
  }
}

</mosaic_0001>

<bundles_post_ra>
// kernel: tpu_custom_call.1
= control target key start
LH: loop header
LB: loop body
LE: loop exit
PB: predicated region body
PF: predicated region fallthrough
CT: control target
= control target key end

     0   :  { %14 = vsyncpa [#allocation3], 0  ;;  %s2790_s0 = inlined_call_operand.hbm [shape: f32[8,16], index: 0, kind: input, shape index: {}]   ;;  %s2791_s1 = inlined_call_operand.vmem [shape: f32[8,4], index: 1, kind: input, shape index: {}]   ;;  %s2792_s2 = inlined_call_operand.vmem [shape: f32[16,64], index: 2, kind: input, shape index: {}]   ;;  %s2793_s3 = inlined_call_operand.vmem [shape: f32[4,64], index: 3, kind: input, shape index: {}]   ;;  %s2794_s4 = inlined_call_operand.vmem [shape: f32[1,64], index: 4, kind: input, shape index: {}]   ;;  %s2795_s5 = inlined_call_operand.hbm [shape: f32[2,32,32], index: 5, kind: input, shape index: {}]   ;;  %s2796_s6 = inlined_call_operand.vmem [shape: f32[1,64], index: 6, kind: input, shape index: {}]   ;;  %s2797_s7 = inlined_call_operand.vmem [shape: f32[2,1,32], index: 7, kind: input, shape index: {}]   ;;  %s2798_s8 = inlined_call_operand.vmem [shape: f32[1,2], index: 8, kind: input, shape index: {}]   ;;  %s2799_s9 = inlined_call_operand.vmem [shape: f32[8,2], index: 9, kind: output, shape index: {}]  }
   0x1   :  { %15 = vsyncpa [#allocation5], 0  ;;  %s2497_s30 = smov [#allocation2]   ;;  %s2498_s11 = smov [#allocation4]  }
   0x2   :  { %s22_s10 = sshll.u32 %s2497_s30, 4  ;;  %s39_s12 = sshll.u32 %s2498_s11, 4  ;;  %s23_s10 = int_to_ptr.vmem [resolvable:$true] %s22_s10  ;;  %s2555_s12 = int_to_ptr.vmem [resolvable:$true] %s39_s12 }
   0x3   :  { %s2449_s15 = scalar_lea.hbm %s2790_s0, 128 }
   0x4   :  { %p2450_p0 = scmp.ne.s32.totalorder %s2790_s0, %s2449_s15  ;;  %p2453_p1 = scmp.lt.u32.totalorder %s2449_s15, %s2790_s0 }
   0x6   :  { %p2455_p2 = pnand %p2453_p1, %p2450_p0 }
   0x8   :  { %2458 = shalt.err (!%p2455_p2)
}
   0x9   :  { %s2459_s20 = scalar_lea.vmem %s23_s10, 128  ;;  %p2464_p4 = scmp.lt.s32.totalorder %s23_s10, %s23_s10 }
   0xa   :  { %p2460_p3 = scmp.ne.s32.totalorder %s23_s10, %s2459_s20  ;;  %p2465_p5 = scmp.lt.s32.totalorder %s2459_s20, %s2459_s20 }
   0xc   :  { %p2466_p6 = por %p2465_p5, %p2464_p4 }
   0xe   :  { %p2467_p7 = pnand %p2466_p6, %p2460_p3 }
  0x10   :  { %2470 = shalt.err (!%p2467_p7)
}
  0x11   :  { %25 = dma.hbm_to_vmem [thread:$0]  %s2790_s0, 128, %s23_s10, [#allocation3]  }
  0x12   :  { %s2471_s25 = scalar_lea.hbm %s2795_s5, 1024 }
  0x13   :  { %p2472_p8 = scmp.ne.s32.totalorder %s2795_s5, %s2471_s25  ;;  %p2475_p9 = scmp.lt.u32.totalorder %s2471_s25, %s2795_s5 }
  0x15   :  { %p2477_p10 = pnand %p2475_p9, %p2472_p8 }
  0x17   :  { %2480 = shalt.err (!%p2477_p10)
}
  0x18   :  { %s2481_s30 = scalar_lea.vmem %s2555_s12, 1024  ;;  %p2486_p12 = scmp.lt.s32.totalorder %s2555_s12, %s2555_s12 }
  0x19   :  { %p2482_p11 = scmp.ne.s32.totalorder %s2555_s12, %s2481_s30  ;;  %p2487_p13 = scmp.lt.s32.totalorder %s2481_s30, %s2481_s30 }
  0x1b   :  { %p2488_p0 = por %p2487_p13, %p2486_p12 }
  0x1d   :  { %p2489_p1 = pnand %p2488_p0, %p2482_p11 }
  0x1f   :  { %2492 = shalt.err (!%p2489_p1)
}
  0x20   :  { %s2499_s0 = smov 128   ;;  %s2500_s10 = smov 8  }
  0x21   :  { %45 = dma.hbm_to_vmem [thread:$0]  %s2795_s5, 1024, %s2555_s12, [#allocation5], %s2499_s0, %s2499_s0, %s2500_s10  }
  0x22   :  { %2493 = dma.done.wait [#allocation3], 128  }
  0x23   :  { %2494 = vsyncadd [#allocation3], 4294967168 }
  0x24   :  { %2495 = dma.done.wait [#allocation5], 1024  }
  0x25   :  { %2496 = vsyncadd [#allocation5], 4294966272  ;;  %v2501_v0 = vmov 0.0   ;;  %vm2502_vm0 = vmmov 0   ;;  %vm67_vm1 = vcmask 1043456   ;;  %vm63_vm2 = vcmask 31744  }
  0x26   :  { %2125 = vmatprep.subr.mxu0 %v2501_v0  ;;  %2127 = vmatprep.mubr.msk.f32.mxu0 %vm2502_vm0, %v2501_v0  ;;  %vm517_vm3 = vcmask 130048   ;;  %v62_v1 = vld [vmem:[%s2793_s3] sm:$0xf]  ;;  %v60_v6 = vld [vmem:[%s2792_s2 + $0x8] sm:$0xff]  ;;  %v2503_v34 = vmov 0.0|0.0   ;;  %v990_v40 = vld [vmem:[#allocation4 + $0x8] sm:$0xff] }
  0x27   :  { %2130 = vmatprep.subr.mxu1 %v2501_v0  ;;  %2132 = vmatprep.mubr.msk.f32.mxu1 %vm2502_vm0, %v2501_v0  ;;  %v61_v2 = vld [vmem:[%s2791_s1] sm:$0xff]  ;;  %v69_v4 = vsel %vm67_vm1, %v62_v1, 0  ;;  %v525_v11 = vand.u32 4294901760, %v60_v6  ;;  %v989_v39 = vld [vmem:[#allocation4] sm:$0xff]  ;;  %v1008_v42 = vand.u32 4294901760, %v990_v40  ;;  %v991_v46 = vld [vmem:[#allocation4 + $0x10] sm:$0xff] }
  0x28   :  { %v59_v3 = vld [vmem:[%s2792_s2] sm:$0xff]  ;;  %v65_v5 = vsel %vm63_vm2, %v61_v2, 0  ;;  %v72_v9 = vand.u32 4294901760, %v69_v4  ;;  %v1005_v41 = vand.u32 4294901760, %v989_v39  ;;  %v1011_v48 = vand.u32 4294901760, %v991_v46  ;;  %s2504_s3 = smov 96  }
  0x29   :  { %v522_v7 = vand.u32 4294901760, %v59_v3  ;;  %v58_v8 = vld [vmem:[#allocation2] sm:$0xff]  ;;  %v137_v10 = vand.u32 4294901760, %v65_v5  ;;  %v607_v16 = vsub.f32 %v60_v6, %v525_v11  ;;  %v2650_v45 = vsub.f32 %v990_v40, %v1008_v42 }
  0x2a   :  { %v519_v12 = vsel %vm517_vm3, %v58_v8, 0  ;;  %2126 = vmatpush3.msra.mxu0 %v72_v9  ;;  %v149_v15 = vsub.f32 %v69_v4, %v72_v9  ;;  %v2646_v43 = vpack.c.bf16 %v1008_v42, %v1005_v41  ;;  %v2648_v44 = vsub.f32 %v989_v39, %v1005_v41  ;;  %v992_v47 = vld [vmem:[#allocation4 + $0x18] sm:$0xff] }
  0x2b   :  { %v600_v13 = vsub.f32 %v59_v3, %v522_v7  ;;  %v138_v14 = vsub.f32 %v65_v5, %v137_v10  ;;  %v2604_v17 = vand.u32 4294901760, %v519_v12  ;;  %2135 = vmatprep.subr.mxu0 %v2501_v0  ;;  %v608_v21 = vand.u32 4294901760, %v607_v16 }
  0x2c   :  { %v150_v19 = vand.u32 4294901760, %v149_v15  ;;  %v2330_v33 = vpack.c.bf16 %v525_v11, %v522_v7  ;;  %v1014_v49 = vand.u32 4294901760, %v992_v47  ;;  %v1086_v50 = vand.u32 4294901760, %v2648_v44 }
  0x2d   :  { %v139_v18 = vand.u32 4294901760, %v138_v14  ;;  %v601_v20 = vand.u32 4294901760, %v600_v13  ;;  %v589_v24 = vsub.f32 %v519_v12, %v2604_v17  ;;  %v609_v28 = vsub.f32 %v607_v16, %v608_v21 }
  0x2e   :  { %v151_v23 = vsub.f32 %v149_v15, %v150_v19  ;;  %v2336_v37 = vpack.c.bf16 %v607_v16, %v600_v13  ;;  %v1093_v51 = vand.u32 4294901760, %v2650_v45  ;;  %v2656_v52 = vpack.c.bf16 %v1014_v49, %v1011_v48 }
  0x2f   :  { %v140_v22 = vsub.f32 %v138_v14, %v139_v18  ;;  %v602_v27 = vsub.f32 %v600_v13, %v601_v20  ;;  %v590_v29 = vand.u32 4294901760, %v589_v24  ;;  %v610_v31 = vand.u32 4294901760, %v609_v28 }
  0x30   :  { %v152_v26 = vand.u32 4294901760, %v151_v23  ;;  %v2342_v38 = vpack.c.bf16 %v608_v21, %v601_v20  ;;  %v2658_v53 = vsub.f32 %v991_v46, %v1011_v48  ;;  %v2660_v54 = vsub.f32 %v992_v47, %v1014_v49  ;;  %v1504_v49 = vld [vmem:[#allocation4 + $0x30] sm:$0xff] }
  0x31   :  { %v141_v25 = vand.u32 4294901760, %v140_v22  ;;  %v603_v30 = vand.u32 4294901760, %v602_v27  ;;  %v591_v32 = vsub.f32 %v589_v24, %v590_v29  ;;  %v1087_v55 = vsub.f32 %v2648_v44, %v1086_v50 }
  0x32   :  { %2131 = vmatpush3.msra.mxu1 %v152_v26  ;;  %v1094_v56 = vsub.f32 %v2650_v45, %v1093_v51  ;;  %v1100_v58 = vand.u32 4294901760, %v2658_v53  ;;  %v1107_v59 = vand.u32 4294901760, %v2660_v54  ;;  %v2360_v4 = vpack.c.bf16 %v2650_v45, %v2648_v44  ;;  %v2030_v44 = vld [vmem:[%s2796_s6] ss:$0 sm:$0xff] }
  0x33   :  { %2128 = vmatmul.mubr.f32.vlgmr.msra.gmra.mrb[0].mxu0 %v141_v25  ;;  %2133 = vmatmul.mubr.f32.vlgmr.msra.gmra.mrb[0].mxu1 %v137_v10  ;;  %v2333_v35 = vpack.c.bf16 %v610_v31, %v603_v30  ;;  %v592_v36 = vand.u32 4294901760, %v591_v32  ;;  %v1088_v57 = vand.u32 4294901760, %v1087_v55  ;;  %v2363_v5 = vpack.c.bf16 %v2660_v54, %v2658_v53  ;;  %v1502_v32 = vld [vmem:[#allocation4 + $0x20] sm:$0xff] }
  0x34   :  { %2136 = vmatpush3.msra.mxu0 %v149_v15  ;;  %2140 = vmatprep.subr.mxu1 %v2501_v0  ;;  %v1095_v60 = vand.u32 4294901760, %v1094_v56  ;;  %v1101_v61 = vsub.f32 %v2658_v53, %v1100_v58  ;;  %v1108_v62 = vsub.f32 %v2660_v54, %v1107_v59  ;;  %v2678_v6 = vpack.c.bf16 %v1093_v51, %v1086_v50  ;;  %v1505_v50 = vld [vmem:[#allocation4 + $0x38] sm:$0xff] }
  0x35   :  { %2137 = vmatprep.mubr.msk.f32.mxu0 %vm2502_vm0, %v2501_v0  ;;  %2141 = vmatpush3.msra.mxu1 %v72_v9  ;;  %v2680_v7 = vpack.c.bf16 %v1107_v59, %v1100_v58  ;;  %v1520_v56 = vand.u32 4294901760, %v1504_v49  ;;  %vm1000_vm4 = vcmask 261120   ;;  %vm2011_vm5 = vcmask 7168  }
  0x36   :  { %2145 = vmatprep.subr.mxu0 %v2501_v0  ;;  %2142 = vmatprep.mubr.msk.f32.mxu1 %vm2502_vm0, %v2501_v0  ;;  %v2670_v63 = vpack.c.bf16 %v1095_v60, %v1088_v57  ;;  %v1102_v1 = vand.u32 4294901760, %v1101_v61  ;;  %v1109_v2 = vand.u32 4294901760, %v1108_v62  ;;  %v1523_v57 = vand.u32 4294901760, %v1505_v50  ;;  %v2029_v60 = vld [vmem:[%s2794_s4] ss:$0 sm:$0xff] }
  0x37   :  { %2138 = vmatmul.mubr.f32.vlgmr.msra.gmra.mrb[2].mxu0 %v138_v14  ;;  %2143 = vmatmul.mubr.f32.vlgmr.msra.gmra.mrb[2].mxu1 %v139_v18  ;;  %vm2021_vm6 = vcmask 15360  }
  0x38   :  { %2146 = vmatpush3.msra.mxu0 %v150_v19  ;;  %2150 = vmatprep.subr.mxu1 %v2501_v0  ;;  %v2672_v3 = vpack.c.bf16 %v1109_v2, %v1102_v1  ;;  %v2695_v2 = vpack.c.bf16 %v1523_v57, %v1520_v56 }
  0x39   :  { %2147 = vmatprep.mubr.msk.f32.mxu0 %vm2502_vm0, %v2501_v0  ;;  %2151 = vmatpush3.msra.mxu1 %v72_v9 }
  0x3a   :  { %2329 = vmatprep.subr.bf16.mxu0 %v2503_v34  ;;  %2152 = vmatprep.mubr.msk.f32.mxu1 %vm2502_vm0, %v2501_v0 }
  0x3b   :  { %2148 = vmatmul.mubr.f32.vlgmr.msra.gmra.mrb[4].mxu0 %v137_v10  ;;  %2153 = vmatmul.mubr.f32.vlgmr.msra.gmra.mrb[4].mxu1 %v137_v10 }
  0x3c   :  { %2331 = vmatpush3.bf16.msra.mxu0 %v2330_v33  ;;  %2332 = vmatprep.subr.bf16.mxu1 %v2503_v34 }
  0x3d   :  { %2159 = vmatprep.mubr.msk.f32.mxu0 %vm2502_vm0, %v2501_v0  ;;  %2334 = vmatpush3.bf16.msra.mxu1 %v2333_v35 }
  0x3e   :  { %2335 = vmatprep.subr.bf16.mxu0 %v2503_v34  ;;  %2166 = vmatprep.mubr.msk.f32.mxu1 %vm2502_vm0, %v2501_v0 }
  0x3f   :  { %2160 = vmatmul.mubr.f32.vlgmr.msra.gmra.mrb[6].mxu0 %v592_v36  ;;  %2338 = vmatprep.subr.bf16.mxu1 %v2503_v34 }
  0x40   :  { %2337 = vmatpush3.bf16.msra.mxu0 %v2336_v37  ;;  %2167 = vmatmul.mubr.f32.vlgmr.msra.gmra.mrb[6].mxu1 %v2604_v17  ;;  %v1514_v37 = vand.u32 4294901760, %v1502_v32 }
  0x41   :  { %2173 = vmatprep.mubr.msk.f32.mxu0 %vm2502_vm0, %v2501_v0  ;;  %2340 = vmatpush3.bf16.msra.mxu1 %v2330_v33 }
  0x42   :  { %2341 = vmatprep.subr.bf16.mxu0 %v2503_v34  ;;  %2180 = vmatprep.mubr.msk.f32.mxu1 %vm2502_vm0, %v2501_v0  ;;  %v2684_v46 = vsub.f32 %v1502_v32, %v1514_v37 }
  0x43   :  { %2174 = vmatmul.mubr.f32.vlgmr.msra.gmra.mrb[8].mxu0 %v589_v24  ;;  %2344 = vmatprep.subr.bf16.mxu1 %v2503_v34 }
  0x44   :  { %2343 = vmatpush3.bf16.msra.mxu0 %v2342_v38  ;;  %2181 = vmatmul.mubr.f32.vlgmr.msra.gmra.mrb[8].mxu1 %v590_v29  ;;  %v1595_v58 = vand.u32 4294901760, %v2684_v46 }
  0x45   :  { %2187 = vmatprep.mubr.msk.f32.mxu0 %vm2502_vm0, %v2501_v0  ;;  %2346 = vmatpush3.bf16.msra.mxu1 %v2330_v33  ;;  %v1503_v33 = vld [vmem:[#allocation4 + $0x28] sm:$0xff] }
  0x46   :  { %2194 = vmatprep.mubr.msk.f32.mxu1 %vm2502_vm0, %v2501_v0  ;;  %2347 = vmatprep.subr.bf16.mxu0 %v2503_v34  ;;  %v1517_v38 = vand.u32 4294901760, %v1503_v33 }
  0x47   :  { %2188 = vmatmul.mubr.f32.vlgmr.msra.gmra.mrb[10].mxu0 %v2604_v17  ;;  %2383 = vmatprep.subr.bf16.mxu1 %v2503_v34 }
  0x48   :  { %2205 = vmatprep.mubr.msk.f32.mxu0 %vm2502_vm0, %v2501_v0  ;;  %2195 = vmatmul.mubr.f32.vlgmr.msra.gmra.mrb[10].mxu1 %v2604_v17  ;;  %v2682_v42 = vpack.c.bf16 %v1517_v38, %v1514_v37  ;;  %v2686_v47 = vsub.f32 %v1503_v33, %v1517_v38  ;;  %v2031_v33 = vld [vmem:[%s2797_s7] ss:$0 sm:$0xff] }
  0x49   :  { %2271 = vmatprep.mubr.msk.f32.mxu1 %vm2502_vm0, %v2501_v0  ;;  %2349 = vmatpush3.bf16.msra.mxu0 %v2646_v43 }
  0x4a   :  { %2350 = vmatprep.subr.bf16.mxu0 %v2503_v34  ;;  %2385 = vmatpush3.bf16.msra.mxu1 %v2682_v42  ;;  %v1602_v61 = vand.u32 4294901760, %v2686_v47 }
  0x4b   :  { %2386 = vmatprep.subr.bf16.mxu1 %v2503_v34 }
  0x4d   :  { %2352 = vmatpush3.bf16.msra.mxu0 %v2656_v52 }
  0x4e   :  { %2353 = vmatprep.subr.bf16.mxu0 %v2503_v34  ;;  %2388 = vmatpush3.bf16.msra.mxu1 %v2695_v2 }
  0x4f   :  { %2389 = vmatprep.subr.bf16.mxu1 %v2503_v34 }
 0x106   :  { %v143_v8 = vpop.f32.mrb[0].mxu0  ;;  %v219_v10 = vpop.f32.mrb[0].mxu1 }
 0x107   :  { %v2129_v9 = vpop.f32.mrb[1].mxu0  ;;  %v220_v11 = vadd.f32 %v219_v10, %v143_v8  ;;  %v2134_v12 = vpop.f32.mrb[1].mxu1  ;;  %v2697_v8 = vsub.f32 %v1504_v49, %v1520_v56  ;;  %v1596_v10 = vsub.f32 %v2684_v46, %v1595_v58 }
 0x108   :  { %v2699_v9 = vsub.f32 %v1505_v50, %v1523_v57 }
 0x10a   :  { %v293_v13 = vpop.f32.mrb[2].mxu0  ;;  %v367_v16 = vpop.f32.mrb[2].mxu1 }
 0x10b   :  { %v294_v14 = vadd.f32 %v293_v13, %v220_v11  ;;  %v2139_v15 = vpop.f32.mrb[3].mxu0  ;;  %v2144_v17 = vpop.f32.mrb[3].mxu1  ;;  %v1603_v11 = vsub.f32 %v2686_v47, %v1602_v61  ;;  %v1609_v13 = vand.u32 4294901760, %v2697_v8 }
 0x10c   :  { %v1597_v15 = vand.u32 4294901760, %v1596_v10 }
 0x10d   :  { %v368_v18 = vadd.f32 %v367_v16, %v294_v14  ;;  %v1616_v14 = vand.u32 4294901760, %v2699_v9  ;;  %v1604_v16 = vand.u32 4294901760, %v1603_v11 }
 0x10e   :  { %v441_v19 = vpop.f32.mrb[4].mxu0  ;;  %v513_v22 = vpop.f32.mrb[4].mxu1 }
 0x10f   :  { %v442_v20 = vadd.f32 %v441_v19, %v368_v18  ;;  %v2149_v21 = vpop.f32.mrb[5].mxu0  ;;  %v2154_v23 = vpop.f32.mrb[5].mxu1  ;;  %v1610_v18 = vsub.f32 %v2697_v8, %v1609_v13  ;;  %v1617_v19 = vsub.f32 %v2699_v9, %v1616_v14  ;;  %v2411_v32 = vpack.c.bf16 %v1616_v14, %v1609_v13 }
 0x111   :  { %v514_v24 = vadd.f32 %v513_v22, %v442_v20  ;;  %v2390_v20 = vpack.c.bf16 %v1604_v16, %v1597_v15  ;;  %v1611_v22 = vand.u32 4294901760, %v1610_v18  ;;  %v1618_v23 = vand.u32 4294901760, %v1617_v19 }
 0x112   :  { %v594_v25 = vpop.f32.mrb[6].mxu0 }
 0x113   :  { %v595_v26 = vadd.f32 %v594_v25, %v514_v24  ;;  %v2161_v27 = vpop.f32.mrb[7].mxu0  ;;  %v675_v28 = vpop.f32.mrb[6].mxu1  ;;  %v2393_v25 = vpack.c.bf16 %v1618_v23, %v1611_v22 }
 0x114   :  { %v2168_v30 = vpop.f32.mrb[7].mxu1 }
 0x115   :  { %v676_v29 = vadd.f32 %v675_v28, %v595_v26  ;;  %v2396_v28 = vpack.c.bf16 %v2686_v47, %v2684_v46  ;;  %v2399_v30 = vpack.c.bf16 %v2699_v9, %v2697_v8 }
 0x116   :  { %v751_v31 = vpop.f32.mrb[8].mxu0 }
 0x117   :  { %v752_v35 = vadd.f32 %v751_v31, %v676_v29  ;;  %v2175_v36 = vpop.f32.mrb[9].mxu0  ;;  %v826_v39 = vpop.f32.mrb[8].mxu1 }
 0x118   :  { %v2182_v41 = vpop.f32.mrb[9].mxu1 }
 0x119   :  { %v827_v40 = vadd.f32 %v826_v39, %v752_v35 }
 0x11a   :  { %v903_v48 = vpop.f32.mrb[10].mxu0 }
 0x11b   :  { %v904_v51 = vadd.f32 %v903_v48, %v827_v40  ;;  %v2189_v55 = vpop.f32.mrb[11].mxu0  ;;  %v976_v59 = vpop.f32.mrb[10].mxu1  ;;  %v2034_v48 = vld [vmem:[%s2798_s8] ss:$0 sm:$0xff] }
 0x11c   :  { %v2196_v1 = vpop.f32.mrb[11].mxu1 }
 0x11d   :  { %v977_v62 = vadd.f32 %v976_v59, %v904_v51 }
 0x11f   :  { %v987_v12 = vadd.f32 %v2029_v60, %v977_v62 }
 0x121   :  { %v988_v17 = vmax.f32 %v987_v12, 0.0 }
 0x123   :  { %1506 = vrot.lane.b32.xlu0 %v988_v17, %s2504_s3  ;;  %v1002_v21 = vsel %vm1000_vm4, %v988_v17, 0 }
 0x124   :  { %v1073_v24 = vand.u32 4294901760, %v1002_v21 }
 0x126   :  { %v1074_v26 = vsub.f32 %v1002_v21, %v1073_v24 }
 0x127   :  { %1508 = vrot.lane.b32.xlu0 %v2030_v44, %s2504_s3 }
 0x128   :  { %v1075_v27 = vand.u32 4294901760, %v1074_v26 }
 0x12a   :  { %v1076_v29 = vsub.f32 %v1074_v26, %v1075_v27 }
 0x12c   :  { %v1077_v31 = vand.u32 4294901760, %v1076_v29 }
 0x12e   :  { %2206 = vmatmul.mubr.f32.vlgmr.msra.gmra.mrb[12].mxu0 %v1077_v31 }
 0x12f   :  { %2355 = vmatpush3.bf16.msra.mxu0 %v2670_v63  ;;  %2216 = vmatprep.mubr.msk.f32.mxu0 %vm2502_vm0, %v2501_v0  ;;  %v2408_v63 = vpack.c.bf16 %v1602_v61, %v1595_v58 }
 0x130   :  { %2356 = vmatprep.subr.bf16.mxu0 %v2503_v34 }
 0x133   :  { %2358 = vmatpush3.bf16.msra.mxu0 %v2672_v3 }
 0x134   :  { %2359 = vmatprep.subr.bf16.mxu0 %v2503_v34 }
 0x136   :  { %2217 = vmatmul.mubr.f32.vlgmr.msra.gmra.mrb[12].mxu0 %v1073_v24 }
 0x137   :  { %2361 = vmatpush3.bf16.msra.mxu0 %v2360_v4  ;;  %2227 = vmatprep.mubr.msk.f32.mxu0 %vm2502_vm0, %v2501_v0 }
 0x138   :  { %2362 = vmatprep.subr.bf16.mxu0 %v2503_v34 }
 0x13b   :  { %2364 = vmatpush3.bf16.msra.mxu0 %v2363_v5 }
 0x13c   :  { %2365 = vmatprep.subr.bf16.mxu0 %v2503_v34 }
 0x13e   :  { %2228 = vmatmul.mubr.f32.vlgmr.msra.gmra.mrb[12].mxu0 %v1074_v26 }
 0x13f   :  { %2367 = vmatpush3.bf16.msra.mxu0 %v2646_v43  ;;  %2238 = vmatprep.mubr.msk.f32.mxu0 %vm2502_vm0, %v2501_v0 }
 0x140   :  { %2368 = vmatprep.subr.bf16.mxu0 %v2503_v34 }
 0x143   :  { %2370 = vmatpush3.bf16.msra.mxu0 %v2656_v52 }
 0x144   :  { %2371 = vmatprep.subr.bf16.mxu0 %v2503_v34 }
 0x146   :  { %2239 = vmatmul.mubr.f32.vlgmr.msra.gmra.mrb[12].mxu0 %v1075_v27 }
 0x147   :  { %2373 = vmatpush3.bf16.msra.mxu0 %v2678_v6  ;;  %2249 = vmatprep.mubr.msk.f32.mxu0 %vm2502_vm0, %v2501_v0 }
 0x148   :  { %2374 = vmatprep.subr.bf16.mxu0 %v2503_v34 }
 0x14b   :  { %2376 = vmatpush3.bf16.msra.mxu0 %v2680_v7 }
 0x14c   :  { %2377 = vmatprep.subr.bf16.mxu0 %v2503_v34 }
 0x14e   :  { %2250 = vmatmul.mubr.f32.vlgmr.msra.gmra.mrb[12].mxu0 %v1073_v24 }
 0x14f   :  { %2379 = vmatpush3.bf16.msra.mxu0 %v2646_v43  ;;  %2260 = vmatprep.mubr.msk.f32.mxu0 %vm2502_vm0, %v2501_v0 }
 0x150   :  { %2380 = vmatprep.subr.bf16.mxu0 %v2503_v34 }
 0x153   :  { %2382 = vmatpush3.bf16.msra.mxu0 %v2656_v52 }
 0x156   :  { %2261 = vmatmul.mubr.f32.vlgmr.msra.gmra.mrb[12].mxu0 %v1073_v24 }
 0x195   :  { %v1507_v45 = vpop.permute.xlu0 %1506 }
 0x196   :  { %v1511_v53 = vsel %vm1000_vm4, %v1507_v45, 0 }
 0x197   :  { %v1582_v54 = vand.u32 4294901760, %v1511_v53 }
 0x199   :  { %v1583_v3 = vsub.f32 %v1511_v53, %v1582_v54  ;;  %v1509_v38 = vpop.permute.xlu0 %1508 }
 0x19b   :  { %v1584_v4 = vand.u32 4294901760, %v1583_v3 }
 0x19d   :  { %v1585_v5 = vsub.f32 %v1583_v3, %v1584_v4 }
 0x19f   :  { %v1586_v6 = vand.u32 4294901760, %v1585_v5 }
 0x1a1   :  { %2272 = vmatmul.mubr.f32.vlgmr.msra.gmra.mrb[12].mxu1 %v1586_v6 }
 0x1a2   :  { %2391 = vmatpush3.bf16.msra.mxu1 %v2390_v20  ;;  %2282 = vmatprep.mubr.msk.f32.mxu1 %vm2502_vm0, %v2501_v0 }
 0x1a3   :  { %2392 = vmatprep.subr.bf16.mxu1 %v2503_v34 }
 0x1a6   :  { %2394 = vmatpush3.bf16.msra.mxu1 %v2393_v25 }
 0x1a7   :  { %2395 = vmatprep.subr.bf16.mxu1 %v2503_v34 }
 0x1a9   :  { %2283 = vmatmul.mubr.f32.vlgmr.msra.gmra.mrb[12].mxu1 %v1582_v54 }
 0x1aa   :  { %2397 = vmatpush3.bf16.msra.mxu1 %v2396_v28  ;;  %2293 = vmatprep.mubr.msk.f32.mxu1 %vm2502_vm0, %v2501_v0 }
 0x1ab   :  { %2398 = vmatprep.subr.bf16.mxu1 %v2503_v34 }
 0x1ae   :  { %2400 = vmatpush3.bf16.msra.mxu1 %v2399_v30 }
 0x1af   :  { %2401 = vmatprep.subr.bf16.mxu1 %v2503_v34 }
 0x1b1   :  { %2294 = vmatmul.mubr.f32.vlgmr.msra.gmra.mrb[12].mxu1 %v1583_v3 }
 0x1b2   :  { %2403 = vmatpush3.bf16.msra.mxu1 %v2682_v42  ;;  %2304 = vmatprep.mubr.msk.f32.mxu1 %vm2502_vm0, %v2501_v0 }
 0x1b3   :  { %2404 = vmatprep.subr.bf16.mxu1 %v2503_v34 }
 0x1b6   :  { %2406 = vmatpush3.bf16.msra.mxu1 %v2695_v2 }
 0x1b7   :  { %2407 = vmatprep.subr.bf16.mxu1 %v2503_v34 }
 0x1b9   :  { %2305 = vmatmul.mubr.f32.vlgmr.msra.gmra.mrb[12].mxu1 %v1584_v4 }
 0x1ba   :  { %2409 = vmatpush3.bf16.msra.mxu1 %v2408_v63  ;;  %2315 = vmatprep.mubr.msk.f32.mxu1 %vm2502_vm0, %v2501_v0 }
 0x1bb   :  { %2410 = vmatprep.subr.bf16.mxu1 %v2503_v34 }
 0x1be   :  { %2412 = vmatpush3.bf16.msra.mxu1 %v2411_v32 }
 0x1bf   :  { %2413 = vmatprep.subr.bf16.mxu1 %v2503_v34 }
 0x1c1   :  { %2316 = vmatmul.mubr.f32.vlgmr.msra.gmra.mrb[12].mxu1 %v1582_v54 }
 0x1c2   :  { %2415 = vmatpush3.bf16.msra.mxu1 %v2682_v42  ;;  %2326 = vmatprep.mubr.msk.f32.mxu1 %vm2502_vm0, %v2501_v0 }
 0x1c3   :  { %2416 = vmatprep.subr.bf16.mxu1 %v2503_v34  ;;  %v2033_v34 = vld [vmem:[%s2797_s7 + $0x1] ss:$0 sm:$0xff] }
 0x1c6   :  { %2418 = vmatpush3.bf16.msra.mxu1 %v2695_v2 }
 0x1c9   :  { %2327 = vmatmul.mubr.f32.vlgmr.msra.gmra.mrb[12].mxu1 %v1582_v54 }
 0x229   :  { %v1485_v43 = vpop.f32.mrb[12].mxu0 }
 0x22a   :  { %v2419_v52 = vadd.f32 %v2030_v44, %v1485_v43  ;;  %v2262_v7 = vpop.f32.mrb[13].mxu0 }
 0x22c   :  { %v1489_v35 = vmax.f32 %v2419_v52, 0.0 }
 0x22e   :  { %v1497_v36 = vmul.f32 %v2031_v33, %v1489_v35 }
 0x230   :  { %v1498_v37 = vsel %vm1000_vm4, %v1497_v36, 0.0 }
 0x231   :  { %1499 = vadd.xlane.f32.xlu1 %v1498_v37 }
 0x29c   :  { %v1994_v39 = vpop.f32.mrb[12].mxu1 }
 0x29d   :  { %v2420_v0 = vadd.f32 %v1994_v39, %v1509_v38  ;;  %v2328_v40 = vpop.f32.mrb[13].mxu1 }
 0x29f   :  { %v1998_v41 = vmax.f32 %v2420_v0, 0.0 }
 0x2a1   :  { %v2007_v42 = vmul.f32 %v2033_v34, %v1998_v41 }
 0x2a3   :  { %v2008_v46 = vsel %vm1000_vm4, %v2007_v42, 0.0 }
 0x2a4   :  { %2009 = vadd.xlane.f32.xlu1 %v2008_v46 }
 0x2be   :  { %v1500_v47 = vpop.xlane.xlu1 %1499 }
 0x331   :  { %v2010_v49 = vpop.xlane.xlu1 %2009 }
 0x332   :  { %v2012_v50 = vsel %vm2011_vm5, %v1500_v47, %v2010_v49 }
 0x333   :  { %v2020_v51 = vadd.f32 %v2034_v48, %v2012_v50 }
 0x335   :  { %2022 = vst.msk [vmem:[%s2799_s9] sm:$0xff] %vm2021_vm6, %v2020_v51 }
 0x336   :  { %2027 = vsyncpa [#allocation3], 1 }
 0x337   :  { %2028 = vsyncpa [#allocation5], 1 }

// kernel: tpu_custom_call.1
= control target key start
LH: loop header
LB: loop body
LE: loop exit
PB: predicated region body
PF: predicated region fallthrough
CT: control target
= control target key end

     0   :  { %14 = vsyncpa [#allocation3], 0  ;;  %s2790_s0 = inlined_call_operand.hbm [shape: f32[8,16], index: 0, kind: input, shape index: {}]   ;;  %s2791_s1 = inlined_call_operand.vmem [shape: f32[8,4], index: 1, kind: input, shape index: {}]   ;;  %s2792_s2 = inlined_call_operand.vmem [shape: f32[16,64], index: 2, kind: input, shape index: {}]   ;;  %s2793_s3 = inlined_call_operand.vmem [shape: f32[4,64], index: 3, kind: input, shape index: {}]   ;;  %s2794_s4 = inlined_call_operand.vmem [shape: f32[1,64], index: 4, kind: input, shape index: {}]   ;;  %s2795_s5 = inlined_call_operand.hbm [shape: f32[2,32,32], index: 5, kind: input, shape index: {}]   ;;  %s2796_s6 = inlined_call_operand.vmem [shape: f32[1,64], index: 6, kind: input, shape index: {}]   ;;  %s2797_s7 = inlined_call_operand.vmem [shape: f32[2,1,32], index: 7, kind: input, shape index: {}]   ;;  %s2798_s8 = inlined_call_operand.vmem [shape: f32[1,2], index: 8, kind: input, shape index: {}]   ;;  %s2799_s9 = inlined_call_operand.vmem [shape: f32[8,2], index: 9, kind: output, shape index: {}]  }
   0x1   :  { %15 = vsyncpa [#allocation5], 0  ;;  %s2497_s30 = smov [#allocation2]   ;;  %s2498_s11 = smov [#allocation4]  }
   0x2   :  { %s22_s10 = sshll.u32 %s2497_s30, 4  ;;  %s39_s12 = sshll.u32 %s2498_s11, 4  ;;  %s23_s10 = int_to_ptr.vmem [resolvable:$true] %s22_s10  ;;  %s2555_s12 = int_to_ptr.vmem [resolvable:$true] %s39_s12 }
   0x3   :  { %s2449_s15 = scalar_lea.hbm %s2790_s0, 128 }
   0x4   :  { %p2450_p0 = scmp.ne.s32.totalorder %s2790_s0, %s2449_s15  ;;  %p2453_p1 = scmp.lt.u32.totalorder %s2449_s15, %s2790_s0 }
   0x6   :  { %p2455_p2 = pnand %p2453_p1, %p2450_p0 }
   0x8   :  { %2458 = shalt.err (!%p2455_p2)
}
   0x9   :  { %s2459_s20 = scalar_lea.vmem %s23_s10, 128  ;;  %p2464_p4 = scmp.lt.s32.totalorder %s23_s10, %s23_s10 }
   0xa   :  { %p2460_p3 = scmp.ne.s32.totalorder %s23_s10, %s2459_s20  ;;  %p2465_p5 = scmp.lt.s32.totalorder %s2459_s20, %s2459_s20 }
   0xc   :  { %p2466_p6 = por %p2465_p5, %p2464_p4 }
   0xe   :  { %p2467_p7 = pnand %p2466_p6, %p2460_p3 }
  0x10   :  { %2470 = shalt.err (!%p2467_p7)
}
  0x11   :  { %25 = dma.hbm_to_vmem [thread:$0]  %s2790_s0, 128, %s23_s10, [#allocation3]  }
  0x12   :  { %s2471_s25 = scalar_lea.hbm %s2795_s5, 1024 }
  0x13   :  { %p2472_p8 = scmp.ne.s32.totalorder %s2795_s5, %s2471_s25  ;;  %p2475_p9 = scmp.lt.u32.totalorder %s2471_s25, %s2795_s5 }
  0x15   :  { %p2477_p10 = pnand %p2475_p9, %p2472_p8 }
  0x17   :  { %2480 = shalt.err (!%p2477_p10)
}
  0x18   :  { %s2481_s30 = scalar_lea.vmem %s2555_s12, 1024  ;;  %p2486_p12 = scmp.lt.s32.totalorder %s2555_s12, %s2555_s12 }
  0x19   :  { %p2482_p11 = scmp.ne.s32.totalorder %s2555_s12, %s2481_s30  ;;  %p2487_p13 = scmp.lt.s32.totalorder %s2481_s30, %s2481_s30 }
  0x1b   :  { %p2488_p0 = por %p2487_p13, %p2486_p12 }
  0x1d   :  { %p2489_p1 = pnand %p2488_p0, %p2482_p11 }
  0x1f   :  { %2492 = shalt.err (!%p2489_p1)
}
  0x20   :  { %s2499_s0 = smov 128   ;;  %s2500_s10 = smov 8  }
  0x21   :  { %45 = dma.hbm_to_vmem [thread:$0]  %s2795_s5, 1024, %s2555_s12, [#allocation5], %s2499_s0, %s2499_s0, %s2500_s10  }
  0x22   :  { %2493 = dma.done.wait [#allocation3], 128  }
  0x23   :  { %2494 = vsyncadd [#allocation3], 4294967168 }
  0x24   :  { %2495 = dma.done.wait [#allocation5], 1024  }
  0x25   :  { %2496 = vsyncadd [#allocation5], 4294966272  ;;  %v2501_v0 = vmov 0.0   ;;  %vm2502_vm0 = vmmov 0   ;;  %vm67_vm1 = vcmask 1043456   ;;  %vm63_vm2 = vcmask 31744  }
  0x26   :  { %2125 = vmatprep.subr.mxu0 %v2501_v0  ;;  %2127 = vmatprep.mubr.msk.f32.mxu0 %vm2502_vm0, %v2501_v0  ;;  %vm517_vm3 = vcmask 130048   ;;  %v62_v1 = vld [vmem:[%s2793_s3] sm:$0xf]  ;;  %v60_v6 = vld [vmem:[%s2792_s2 + $0x8] sm:$0xff]  ;;  %v2503_v34 = vmov 0.0|0.0   ;;  %v990_v40 = vld [vmem:[#allocation4 + $0x8] sm:$0xff] }
  0x27   :  { %2130 = vmatprep.subr.mxu1 %v2501_v0  ;;  %2132 = vmatprep.mubr.msk.f32.mxu1 %vm2502_vm0, %v2501_v0  ;;  %v61_v2 = vld [vmem:[%s2791_s1] sm:$0xff]  ;;  %v69_v4 = vsel %vm67_vm1, %v62_v1, 0  ;;  %v525_v11 = vand.u32 4294901760, %v60_v6  ;;  %v989_v39 = vld [vmem:[#allocation4] sm:$0xff]  ;;  %v1008_v42 = vand.u32 4294901760, %v990_v40  ;;  %v991_v46 = vld [vmem:[#allocation4 + $0x10] sm:$0xff] }
  0x28   :  { %v59_v3 = vld [vmem:[%s2792_s2] sm:$0xff]  ;;  %v65_v5 = vsel %vm63_vm2, %v61_v2, 0  ;;  %v72_v9 = vand.u32 4294901760, %v69_v4  ;;  %v1005_v41 = vand.u32 4294901760, %v989_v39  ;;  %v1011_v48 = vand.u32 4294901760, %v991_v46  ;;  %s2504_s3 = smov 96  }
  0x29   :  { %v522_v7 = vand.u32 4294901760, %v59_v3  ;;  %v58_v8 = vld [vmem:[#allocation2] sm:$0xff]  ;;  %v137_v10 = vand.u32 4294901760, %v65_v5  ;;  %v607_v16 = vsub.f32 %v60_v6, %v525_v11  ;;  %v2650_v45 = vsub.f32 %v990_v40, %v1008_v42 }
  0x2a   :  { %v519_v12 = vsel %vm517_vm3, %v58_v8, 0  ;;  %2126 = vmatpush3.msra.mxu0 %v72_v9  ;;  %v149_v15 = vsub.f32 %v69_v4, %v72_v9  ;;  %v2646_v43 = vpack.c.bf16 %v1008_v42, %v1005_v41  ;;  %v2648_v44 = vsub.f32 %v989_v39, %v1005_v41  ;;  %v992_v47 = vld [vmem:[#allocation4 + $0x18] sm:$0xff] }
  0x2b   :  { %v600_v13 = vsub.f32 %v59_v3, %v522_v7  ;;  %v138_v14 = vsub.f32 %v65_v5, %v137_v10  ;;  %v2604_v17 = vand.u32 4294901760, %v519_v12  ;;  %2135 = vmatprep.subr.mxu0 %v2501_v0  ;;  %v608_v21 = vand.u32 4294901760, %v607_v16 }
  0x2c   :  { %v150_v19 = vand.u32 4294901760, %v149_v15  ;;  %v2330_v33 = vpack.c.bf16 %v525_v11, %v522_v7  ;;  %v1014_v49 = vand.u32 4294901760, %v992_v47  ;;  %v1086_v50 = vand.u32 4294901760, %v2648_v44 }
  0x2d   :  { %v139_v18 = vand.u32 4294901760, %v138_v14  ;;  %v601_v20 = vand.u32 4294901760, %v600_v13  ;;  %v589_v24 = vsub.f32 %v519_v12, %v2604_v17  ;;  %v609_v28 = vsub.f32 %v607_v16, %v608_v21 }
  0x2e   :  { %v151_v23 = vsub.f32 %v149_v15, %v150_v19  ;;  %v2336_v37 = vpack.c.bf16 %v607_v16, %v600_v13  ;;  %v1093_v51 = vand.u32 4294901760, %v2650_v45  ;;  %v2656_v52 = vpack.c.bf16 %v1014_v49, %v1011_v48 }
  0x2f   :  { %v140_v22 = vsub.f32 %v138_v14, %v139_v18  ;;  %v602_v27 = vsub.f32 %v600_v13, %v601_v20  ;;  %v590_v29 = vand.u32 4294901760, %v589_v24  ;;  %v610_v31 = vand.u32 4294901760, %v609_v28 }
  0x30   :  { %v152_v26 = vand.u32 4294901760, %v151_v23  ;;  %v2342_v38 = vpack.c.bf16 %v608_v21, %v601_v20  ;;  %v2658_v53 = vsub.f32 %v991_v46, %v1011_v48  ;;  %v2660_v54 = vsub.f32 %v992_v47, %v1014_v49  ;;  %v1504_v49 = vld [vmem:[#allocation4 + $0x30] sm:$0xff] }
  0x31   :  { %v141_v25 = vand.u32 4294901760, %v140_v22  ;;  %v603_v30 = vand.u32 4294901760, %v602_v27  ;;  %v591_v32 = vsub.f32 %v589_v24, %v590_v29  ;;  %v1087_v55 = vsub.f32 %v2648_v44, %v1086_v50 }
  0x32   :  { %2131 = vmatpush3.msra.mxu1 %v152_v26  ;;  %v1094_v56 = vsub.f32 %v2650_v45, %v1093_v51  ;;  %v1100_v58 = vand.u32 4294901760, %v2658_v53  ;;  %v1107_v59 = vand.u32 4294901760, %v2660_v54  ;;  %v2360_v4 = vpack.c.bf16 %v2650_v45, %v2648_v44  ;;  %v2030_v44 = vld [vmem:[%s2796_s6] ss:$0 sm:$0xff] }
  0x33   :  { %2128 = vmatmul.mubr.f32.vlgmr.msra.gmra.mrb[0].mxu0 %v141_v25  ;;  %2133 = vmatmul.mubr.f32.vlgmr.msra.gmra.mrb[0].mxu1 %v137_v10  ;;  %v2333_v35 = vpack.c.bf16 %v610_v31, %v603_v30  ;;  %v592_v36 = vand.u32 4294901760, %v591_v32  ;;  %v1088_v57 = vand.u32 4294901760, %v1087_v55  ;;  %v2363_v5 = vpack.c.bf16 %v2660_v54, %v2658_v53  ;;  %v1502_v32 = vld [vmem:[#allocation4 + $0x20] sm:$0xff] }
  0x34   :  { %2136 = vmatpush3.msra.mxu0 %v149_v15  ;;  %2140 = vmatprep.subr.mxu1 %v2501_v0  ;;  %v1095_v60 = vand.u32 4294901760, %v1094_v56  ;;  %v1101_v61 = vsub.f32 %v2658_v53, %v1100_v58  ;;  %v1108_v62 = vsub.f32 %v2660_v54, %v1107_v59  ;;  %v2678_v6 = vpack.c.bf16 %v1093_v51, %v1086_v50  ;;  %v1505_v50 = vld [vmem:[#allocation4 + $0x38] sm:$0xff] }
  0x35   :  { %2137 = vmatprep.mubr.msk.f32.mxu0 %vm2502_vm0, %v2501_v0  ;;  %2141 = vmatpush3.msra.mxu1 %v72_v9  ;;  %v2680_v7 = vpack.c.bf16 %v1107_v59, %v1100_v58  ;;  %v1520_v56 = vand.u32 4294901760, %v1504_v49  ;;  %vm1000_vm4 = vcmask 261120   ;;  %vm2011_vm5 = vcmask 7168  }
  0x36   :  { %2145 = vmatprep.subr.mxu0 %v2501_v0  ;;  %2142 = vmatprep.mubr.msk.f32.mxu1 %vm2502_vm0, %v2501_v0  ;;  %v2670_v63 = vpack.c.bf16 %v1095_v60, %v1088_v57  ;;  %v1102_v1 = vand.u32 4294901760, %v1101_v61  ;;  %v1109_v2 = vand.u32 4294901760, %v1108_v62  ;;  %v1523_v57 = vand.u32 4294901760, %v1505_v50  ;;  %v2029_v60 = vld [vmem:[%s2794_s4] ss:$0 sm:$0xff] }
  0x37   :  { %2138 = vmatmul.mubr.f32.vlgmr.msra.gmra.mrb[2].mxu0 %v138_v14  ;;  %2143 = vmatmul.mubr.f32.vlgmr.msra.gmra.mrb[2].mxu1 %v139_v18  ;;  %vm2021_vm6 = vcmask 15360  }
  0x38   :  { %2146 = vmatpush3.msra.mxu0 %v150_v19  ;;  %2150 = vmatprep.subr.mxu1 %v2501_v0  ;;  %v2672_v3 = vpack.c.bf16 %v1109_v2, %v1102_v1  ;;  %v2695_v2 = vpack.c.bf16 %v1523_v57, %v1520_v56 }
  0x39   :  { %2147 = vmatprep.mubr.msk.f32.mxu0 %vm2502_vm0, %v2501_v0  ;;  %2151 = vmatpush3.msra.mxu1 %v72_v9 }
  0x3a   :  { %2329 = vmatprep.subr.bf16.mxu0 %v2503_v34  ;;  %2152 = vmatprep.mubr.msk.f32.mxu1 %vm2502_vm0, %v2501_v0 }
  0x3b   :  { %2148 = vmatmul.mubr.f32.vlgmr.msra.gmra.mrb[4].mxu0 %v137_v10  ;;  %2153 = vmatmul.mubr.f32.vlgmr.msra.gmra.mrb[4].mxu1 %v137_v10 }
  0x3c   :  { %2331 = vmatpush3.bf16.msra.mxu0 %v2330_v33  ;;  %2332 = vmatprep.subr.bf16.mxu1 %v2503_v34 }
  0x3d   :  { %2159 = vmatprep.mubr.msk.f32.mxu0 %vm2502_vm0, %v2501_v0  ;;  %2334 = vmatpush3.bf16.msra.mxu1 %v2333_v35 }
  0x3e   :  { %2335 = vmatprep.subr.bf16.mxu0 %v2503_v34  ;;  %2166 = vmatprep.mubr.msk.f32.mxu1 %vm2502_vm0, %v2501_v0 }
  0x3f   :  { %2160 = vmatmul.mubr.f32.vlgmr.msra.gmra.mrb[6].mxu0 %v592_v36  ;;  %2338 = vmatprep.subr.bf16.mxu1 %v2503_v34 }
  0x40   :  { %2337 = vmatpush3.bf16.msra.mxu0 %v2336_v37  ;;  %2167 = vmatmul.mubr.f32.vlgmr.msra.gmra.mrb[6].mxu1 %v2604_v17  ;;  %v1514_v37 = vand.u32 4294901760, %v1502_v32 }
  0x41   :  { %2173 = vmatprep.mubr.msk.f32.mxu0 %vm2502_vm0, %v2501_v0  ;;  %2340 = vmatpush3.bf16.msra.mxu1 %v2330_v33 }
  0x42   :  { %2341 = vmatprep.subr.bf16.mxu0 %v2503_v34  ;;  %2180 = vmatprep.mubr.msk.f32.mxu1 %vm2502_vm0, %v2501_v0  ;;  %v2684_v46 = vsub.f32 %v1502_v32, %v1514_v37 }
  0x43   :  { %2174 = vmatmul.mubr.f32.vlgmr.msra.gmra.mrb[8].mxu0 %v589_v24  ;;  %2344 = vmatprep.subr.bf16.mxu1 %v2503_v34 }
  0x44   :  { %2343 = vmatpush3.bf16.msra.mxu0 %v2342_v38  ;;  %2181 = vmatmul.mubr.f32.vlgmr.msra.gmra.mrb[8].mxu1 %v590_v29  ;;  %v1595_v58 = vand.u32 4294901760, %v2684_v46 }
  0x45   :  { %2187 = vmatprep.mubr.msk.f32.mxu0 %vm2502_vm0, %v2501_v0  ;;  %2346 = vmatpush3.bf16.msra.mxu1 %v2330_v33  ;;  %v1503_v33 = vld [vmem:[#allocation4 + $0x28] sm:$0xff] }
  0x46   :  { %2194 = vmatprep.mubr.msk.f32.mxu1 %vm2502_vm0, %v2501_v0  ;;  %2347 = vmatprep.subr.bf16.mxu0 %v2503_v34  ;;  %v1517_v38 = vand.u32 4294901760, %v1503_v33 }
  0x47   :  { %2188 = vmatmul.mubr.f32.vlgmr.msra.gmra.mrb[10].mxu0 %v2604_v17  ;;  %2383 = vmatprep.subr.bf16.mxu1 %v2503_v34 }
  0x48   :  { %2205 = vmatprep.mubr.msk.f32.mxu0 %vm2502_vm0, %v2501_v0  ;;  %2195 = vmatmul.mubr.f32.vlgmr.msra.gmra.mrb[10].mxu1 %v2604_v17  ;;  %v2682_v42 = vpack.c.bf16 %v1517_v38, %v1514_v37  ;;  %v2686_v47 = vsub.f32 %v1503_v33, %v1517_v38  ;;  %v2031_v33 = vld [vmem:[%s2797_s7] ss:$0 sm:$0xff] }
  0x49   :  { %2271 = vmatprep.mubr.msk.f32.mxu1 %vm2502_vm0, %v2501_v0  ;;  %2349 = vmatpush3.bf16.msra.mxu0 %v2646_v43 }
  0x4a   :  { %2350 = vmatprep.subr.bf16.mxu0 %v2503_v34  ;;  %2385 = vmatpush3.bf16.msra.mxu1 %v2682_v42  ;;  %v1602_v61 = vand.u32 4294901760, %v2686_v47 }
  0x4b   :  { %2386 = vmatprep.subr.bf16.mxu1 %v2503_v34 }
  0x4d   :  { %2352 = vmatpush3.bf16.msra.mxu0 %v2656_v52 }
  0x4e   :  { %2353 = vmatprep.subr.bf16.mxu0 %v2503_v34  ;;  %2388 = vmatpush3.bf16.msra.mxu1 %v2695_v2 }
  0x4f   :  { %2389 = vmatprep.subr.bf16.mxu1 %v2503_v34 }
 0x106   :  { %v143_v8 = vpop.f32.mrb[0].mxu0  ;;  %v219_v10 = vpop.f32.mrb[0].mxu1 }
 0x107   :  { %v2129_v9 = vpop.f32.mrb[1].mxu0  ;;  %v220_v11 = vadd.f32 %v219_v10, %v143_v8  ;;  %v2134_v12 = vpop.f32.mrb[1].mxu1  ;;  %v2697_v8 = vsub.f32 %v1504_v49, %v1520_v56  ;;  %v1596_v10 = vsub.f32 %v2684_v46, %v1595_v58 }
 0x108   :  { %v2699_v9 = vsub.f32 %v1505_v50, %v1523_v57 }
 0x10a   :  { %v293_v13 = vpop.f32.mrb[2].mxu0  ;;  %v367_v16 = vpop.f32.mrb[2].mxu1 }
 0x10b   :  { %v294_v14 = vadd.f32 %v293_v13, %v220_v11  ;;  %v2139_v15 = vpop.f32.mrb[3].mxu0  ;;  %v2144_v17 = vpop.f32.mrb[3].mxu1  ;;  %v1603_v11 = vsub.f32 %v2686_v47, %v1602_v61  ;;  %v1609_v13 = vand.u32 4294901760, %v2697_v8 }
 0x10c   :  { %v1597_v15 = vand.u32 4294901760, %v1596_v10 }
 0x10d   :  { %v368_v18 = vadd.f32 %v367_v16, %v294_v14  ;;  %v1616_v14 = vand.u32 4294901760, %v2699_v9  ;;  %v1604_v16 = vand.u32 4294901760, %v1603_v11 }
 0x10e   :  { %v441_v19 = vpop.f32.mrb[4].mxu0  ;;  %v513_v22 = vpop.f32.mrb[4].mxu1 }
 0x10f   :  { %v442_v20 = vadd.f32 %v441_v19, %v368_v18  ;;  %v2149_v21 = vpop.f32.mrb[5].mxu0  ;;  %v2154_v23 = vpop.f32.mrb[5].mxu1  ;;  %v1610_v18 = vsub.f32 %v2697_v8, %v1609_v13  ;;  %v1617_v19 = vsub.f32 %v2699_v9, %v1616_v14  ;;  %v2411_v32 = vpack.c.bf16 %v1616_v14, %v1609_v13 }
 0x111   :  { %v514_v24 = vadd.f32 %v513_v22, %v442_v20  ;;  %v2390_v20 = vpack.c.bf16 %v1604_v16, %v1597_v15  ;;  %v1611_v22 = vand.u32 4294901760, %v1610_v18  ;;  %v1618_v23 = vand.u32 4294901760, %v1617_v19 }
 0x112   :  { %v594_v25 = vpop.f32.mrb[6].mxu0 }
 0x113   :  { %v595_v26 = vadd.f32 %v594_v25, %v514_v24  ;;  %v2161_v27 = vpop.f32.mrb[7].mxu0  ;;  %v675_v28 = vpop.f32.mrb[6].mxu1  ;;  %v2393_v25 = vpack.c.bf16 %v1618_v23, %v1611_v22 }
 0x114   :  { %v2168_v30 = vpop.f32.mrb[7].mxu1 }
 0x115   :  { %v676_v29 = vadd.f32 %v675_v28, %v595_v26  ;;  %v2396_v28 = vpack.c.bf16 %v2686_v47, %v2684_v46  ;;  %v2399_v30 = vpack.c.bf16 %v2699_v9, %v2697_v8 }
 0x116   :  { %v751_v31 = vpop.f32.mrb[8].mxu0 }
 0x117   :  { %v752_v35 = vadd.f32 %v751_v31, %v676_v29  ;;  %v2175_v36 = vpop.f32.mrb[9].mxu0  ;;  %v826_v39 = vpop.f32.mrb[8].mxu1 }
 0x118   :  { %v2182_v41 = vpop.f32.mrb[9].mxu1 }
 0x119   :  { %v827_v40 = vadd.f32 %v826_v39, %v752_v35 }
 0x11a   :  { %v903_v48 = vpop.f32.mrb[10].mxu0 }
 0x11b   :  { %v904_v51 = vadd.f32 %v903_v48, %v827_v40  ;;  %v2189_v55 = vpop.f32.mrb[11].mxu0  ;;  %v976_v59 = vpop.f32.mrb[10].mxu1  ;;  %v2034_v48 = vld [vmem:[%s2798_s8] ss:$0 sm:$0xff] }
 0x11c   :  { %v2196_v1 = vpop.f32.mrb[11].mxu1 }
 0x11d   :  { %v977_v62 = vadd.f32 %v976_v59, %v904_v51 }
 0x11f   :  { %v987_v12 = vadd.f32 %v2029_v60, %v977_v62 }
 0x121   :  { %v988_v17 = vmax.f32 %v987_v12, 0.0 }
 0x123   :  { %1506 = vrot.lane.b32.xlu0 %v988_v17, %s2504_s3  ;;  %v1002_v21 = vsel %vm1000_vm4, %v988_v17, 0 }
 0x124   :  { %v1073_v24 = vand.u32 4294901760, %v1002_v21 }
 0x126   :  { %v1074_v26 = vsub.f32 %v1002_v21, %v1073_v24 }
 0x127   :  { %1508 = vrot.lane.b32.xlu0 %v2030_v44, %s2504_s3 }
 0x128   :  { %v1075_v27 = vand.u32 4294901760, %v1074_v26 }
 0x12a   :  { %v1076_v29 = vsub.f32 %v1074_v26, %v1075_v27 }
 0x12c   :  { %v1077_v31 = vand.u32 4294901760, %v1076_v29 }
 0x12e   :  { %2206 = vmatmul.mubr.f32.vlgmr.msra.gmra.mrb[12].mxu0 %v1077_v31 }
 0x12f   :  { %2355 = vmatpush3.bf16.msra.mxu0 %v2670_v63  ;;  %2216 = vmatprep.mubr.msk.f32.mxu0 %vm2502_vm0, %v2501_v0  ;;  %v2408_v63 = vpack.c.bf16 %v1602_v61, %v1595_v58 }
 0x130   :  { %2356 = vmatprep.subr.bf16.mxu0 %v2503_v34 }
 0x133   :  { %2358 = vmatpush3.bf16.msra.mxu0 %v2672_v3 }
 0x134   :  { %2359 = vmatprep.subr.bf16.mxu0 %v2503_v34 }
 0x136   :  { %2217 = vmatmul.mubr.f32.vlgmr.msra.gmra.mrb[12].mxu0 %v1073_v24 }
 0x137   :  { %2361 = vmatpush3.bf16.msra.mxu0 %v2360_v4  ;;  %2227 = vmatprep.mubr.msk.f32.mxu0 %vm2502_vm0, %v2501_v0 }
 0x138   :  { %2362 = vmatprep.subr.bf16.mxu0 %v2503_v34 }
 0x13b   :  { %2364 = vmatpush3.bf16.msra.mxu0 %v2363_v5 }
 0x13c   :  { %2365 = vmatprep.subr.bf16.mxu0 %v2503_v34 }
 0x13e   :  { %2228 = vmatmul.mubr.f32.vlgmr.msra.gmra.mrb[12].mxu0 %v1074_v26 }
 0x13f   :  { %2367 = vmatpush3.bf16.msra.mxu0 %v2646_v43  ;;  %2238 = vmatprep.mubr.msk.f32.mxu0 %vm2502_vm0, %v2501_v0 }
 0x140   :  { %2368 = vmatprep.subr.bf16.mxu0 %v2503_v34 }
 0x143   :  { %2370 = vmatpush3.bf16.msra.mxu0 %v2656_v52 }
 0x144   :  { %2371 = vmatprep.subr.bf16.mxu0 %v2503_v34 }
 0x146   :  { %2239 = vmatmul.mubr.f32.vlgmr.msra.gmra.mrb[12].mxu0 %v1075_v27 }
 0x147   :  { %2373 = vmatpush3.bf16.msra.mxu0 %v2678_v6  ;;  %2249 = vmatprep.mubr.msk.f32.mxu0 %vm2502_vm0, %v2501_v0 }
 0x148   :  { %2374 = vmatprep.subr.bf16.mxu0 %v2503_v34 }
 0x14b   :  { %2376 = vmatpush3.bf16.msra.mxu0 %v2680_v7 }
 0x14c   :  { %2377 = vmatprep.subr.bf16.mxu0 %v2503_v34 }
 0x14e   :  { %2250 = vmatmul.mubr.f32.vlgmr.msra.gmra.mrb[12].mxu0 %v1073_v24 }
 0x14f   :  { %2379 = vmatpush3.bf16.msra.mxu0 %v2646_v43  ;;  %2260 = vmatprep.mubr.msk.f32.mxu0 %vm2502_vm0, %v2501_v0 }
 0x150   :  { %2380 = vmatprep.subr.bf16.mxu0 %v2503_v34 }
 0x153   :  { %2382 = vmatpush3.bf16.msra.mxu0 %v2656_v52 }
 0x156   :  { %2261 = vmatmul.mubr.f32.vlgmr.msra.gmra.mrb[12].mxu0 %v1073_v24 }
 0x195   :  { %v1507_v45 = vpop.permute.xlu0 %1506 }
 0x196   :  { %v1511_v53 = vsel %vm1000_vm4, %v1507_v45, 0 }
 0x197   :  { %v1582_v54 = vand.u32 4294901760, %v1511_v53 }
 0x199   :  { %v1583_v3 = vsub.f32 %v1511_v53, %v1582_v54  ;;  %v1509_v38 = vpop.permute.xlu0 %1508 }
 0x19b   :  { %v1584_v4 = vand.u32 4294901760, %v1583_v3 }
 0x19d   :  { %v1585_v5 = vsub.f32 %v1583_v3, %v1584_v4 }
 0x19f   :  { %v1586_v6 = vand.u32 4294901760, %v1585_v5 }
 0x1a1   :  { %2272 = vmatmul.mubr.f32.vlgmr.msra.gmra.mrb[12].mxu1 %v1586_v6 }
 0x1a2   :  { %2391 = vmatpush3.bf16.msra.mxu1 %v2390_v20  ;;  %2282 = vmatprep.mubr.msk.f32.mxu1 %vm2502_vm0, %v2501_v0 }
 0x1a3   :  { %2392 = vmatprep.subr.bf16.mxu1 %v2503_v34 }
 0x1a6   :  { %2394 = vmatpush3.bf16.msra.mxu1 %v2393_v25 }
 0x1a7   :  { %2395 = vmatprep.subr.bf16.mxu1 %v2503_v34 }
 0x1a9   :  { %2283 = vmatmul.mubr.f32.vlgmr.msra.gmra.mrb[12].mxu1 %v1582_v54 }
 0x1aa   :  { %2397 = vmatpush3.bf16.msra.mxu1 %v2396_v28  ;;  %2293 = vmatprep.mubr.msk.f32.mxu1 %vm2502_vm0, %v2501_v0 }
 0x1ab   :  { %2398 = vmatprep.subr.bf16.mxu1 %v2503_v34 }
 0x1ae   :  { %2400 = vmatpush3.bf16.msra.mxu1 %v2399_v30 }
 0x1af   :  { %2401 = vmatprep.subr.bf16.mxu1 %v2503_v34 }
 0x1b1   :  { %2294 = vmatmul.mubr.f32.vlgmr.msra.gmra.mrb[12].mxu1 %v1583_v3 }
 0x1b2   :  { %2403 = vmatpush3.bf16.msra.mxu1 %v2682_v42  ;;  %2304 = vmatprep.mubr.msk.f32.mxu1 %vm2502_vm0, %v2501_v0 }
 0x1b3   :  { %2404 = vmatprep.subr.bf16.mxu1 %v2503_v34 }
 0x1b6   :  { %2406 = vmatpush3.bf16.msra.mxu1 %v2695_v2 }
 0x1b7   :  { %2407 = vmatprep.subr.bf16.mxu1 %v2503_v34 }
 0x1b9   :  { %2305 = vmatmul.mubr.f32.vlgmr.msra.gmra.mrb[12].mxu1 %v1584_v4 }
 0x1ba   :  { %2409 = vmatpush3.bf16.msra.mxu1 %v2408_v63  ;;  %2315 = vmatprep.mubr.msk.f32.mxu1 %vm2502_vm0, %v2501_v0 }
 0x1bb   :  { %2410 = vmatprep.subr.bf16.mxu1 %v2503_v34 }
 0x1be   :  { %2412 = vmatpush3.bf16.msra.mxu1 %v2411_v32 }
 0x1bf   :  { %2413 = vmatprep.subr.bf16.mxu1 %v2503_v34 }
 0x1c1   :  { %2316 = vmatmul.mubr.f32.vlgmr.msra.gmra.mrb[12].mxu1 %v1582_v54 }
 0x1c2   :  { %2415 = vmatpush3.bf16.msra.mxu1 %v2682_v42  ;;  %2326 = vmatprep.mubr.msk.f32.mxu1 %vm2502_vm0, %v2501_v0 }
 0x1c3   :  { %2416 = vmatprep.subr.bf16.mxu1 %v2503_v34  ;;  %v2033_v34 = vld [vmem:[%s2797_s7 + $0x1] ss:$0 sm:$0xff] }
 0x1c6   :  { %2418 = vmatpush3.bf16.msra.mxu1 %v2695_v2 }
 0x1c9   :  { %2327 = vmatmul.mubr.f32.vlgmr.msra.gmra.mrb[12].mxu1 %v1582_v54 }
 0x229   :  { %v1485_v43 = vpop.f32.mrb[12].mxu0 }
 0x22a   :  { %v2419_v52 = vadd.f32 %v2030_v44, %v1485_v43  ;;  %v2262_v7 = vpop.f32.mrb[13].mxu0 }
 0x22c   :  { %v1489_v35 = vmax.f32 %v2419_v52, 0.0 }
 0x22e   :  { %v1497_v36 = vmul.f32 %v2031_v33, %v1489_v35 }
 0x230   :  { %v1498_v37 = vsel %vm1000_vm4, %v1497_v36, 0.0 }
 0x231   :  { %1499 = vadd.xlane.f32.xlu1 %v1498_v37 }
 0x29c   :  { %v1994_v39 = vpop.f32.mrb[12].mxu1 }
 0x29d   :  { %v2420_v0 = vadd.f32 %v1994_v39, %v1509_v38  ;;  %v2328_v40 = vpop.f32.mrb[13].mxu1 }
 0x29f   :  { %v1998_v41 = vmax.f32 %v2420_v0, 0.0 }
 0x2a1   :  { %v2007_v42 = vmul.f32 %v2033_v34, %v1998_v41 }
 0x2a3   :  { %v2008_v46 = vsel %vm1000_vm4, %v2007_v42, 0.0 }
 0x2a4   :  { %2009 = vadd.xlane.f32.xlu1 %v2008_v46 }
 0x2be   :  { %v1500_v47 = vpop.xlane.xlu1 %1499 }
 0x331   :  { %v2010_v49 = vpop.xlane.xlu1 %2009 }
 0x332   :  { %v2012_v50 = vsel %vm2011_vm5, %v1500_v47, %v2010_v49 }
 0x333   :  { %v2020_v51 = vadd.f32 %v2034_v48, %v2012_v50 }
 0x335   :  { %2022 = vst.msk [vmem:[%s2799_s9] sm:$0xff] %vm2021_vm6, %v2020_v51 }
 0x336   :  { %2027 = vsyncpa [#allocation3], 1 }
 0x337   :  { %2028 = vsyncpa [#allocation5], 1 }

</bundles_post_ra>
